<compile_context>
chip_gen: v5e
topology: v5e:2x2
jax: 0.10.0
libtpu: 0.0.40
codegen_flags: <defaults>
</compile_context>

<pallas_src>
import functools

import jax
import jax.numpy as jnp
from jax.experimental import pallas as pl
from jax.experimental.pallas import tpu as pltpu


def _round_up(x, m):
    return (x + m - 1) // m * m


# ---------------------------------------------------------------------------
# im2col glue (XLA): [B, C, D, H, W] -> [B, C*k^3, S], row order (c, kd, kh, kw)
# TODO(synk): build patches in-kernel from a haloed x/h tile DMA'd to VMEM to
# avoid materializing the k^3-times-larger im2col tensor in HBM at production
# volumes (largest remaining HBM stream).
# ---------------------------------------------------------------------------
def _im2col(x, k):
    B, C, D, H, W = x.shape
    p = k // 2
    xp = jnp.pad(x, ((0, 0), (0, 0), (p, p), (p, p), (p, p)))
    cols = []
    for kd in range(k):
        for kh in range(k):
            for kw in range(k):
                cols.append(xp[:, :, kd:kd + D, kh:kh + H, kw:kw + W])
    pat = jnp.stack(cols, axis=2)                    # [B, C, k^3, D, H, W]
    return pat.reshape(B, C * k * k * k, D * H * W)  # [B, K, S]


# ---------------------------------------------------------------------------
# Fused kernel: lane-dense U/V conv matmuls + running InstanceNorm statistics
# over S tiles, then (on the last S tile of each batch) folded-InstanceNorm
# + ReLU + LSTM gate math writing the resident h / c_new output blocks.
# ---------------------------------------------------------------------------
def _convlstm_kernel(px_ref, ph_ref, wu_ref, wv_ref, gb_ref, c_ref,
                     h_ref, c_out_ref,
                     u_sc, v_sc, su_sc, qu_sc, sv_sc, qv_sc,
                     *, hidden_dim, s_valid, s_tile, n_s, eps):
    # px_ref: (1, Kxp, St) bf16      ph_ref: (1, Khp, St) bf16
    # wu_ref: (4C, Kxp) bf16         wv_ref: (4C, Khp) bf16
    # gb_ref: (8C, 2) f32  [gamma | beta]
    # c_ref:  (1, C, Sp) f32 (resident per batch)
    # h_ref / c_out_ref: (1, C, Sp) f32 (resident per batch, written at finalize)
    # u_sc / v_sc: (nS, 4C, St) f32  su/qu/sv/qv: (4C, 1) f32 running stats
    s_idx = pl.program_id(1)
    C = hidden_dim
    C4 = 4 * C

    @pl.when(s_idx == 0)
    def _():
        su_sc[...] = jnp.zeros_like(su_sc)
        qu_sc[...] = jnp.zeros_like(qu_sc)
        sv_sc[...] = jnp.zeros_like(sv_sc)
        qv_sc[...] = jnp.zeros_like(qv_sc)

    # Conv bias intentionally omitted: InstanceNorm subtracts the per-(b, ch)
    # mean, which cancels any per-channel constant exactly.  Padded S lanes
    # (zero patches) therefore contribute exactly 0 to the statistics.
    u = jnp.dot(wu_ref[...], px_ref[0], preferred_element_type=jnp.float32)
    v = jnp.dot(wv_ref[...], ph_ref[0], preferred_element_type=jnp.float32)
    u_sc[s_idx] = u
    v_sc[s_idx] = v
    su_sc[...] += jnp.sum(u, axis=-1, keepdims=True)
    qu_sc[...] += jnp.sum(u * u, axis=-1, keepdims=True)
    sv_sc[...] += jnp.sum(v, axis=-1, keepdims=True)
    qv_sc[...] += jnp.sum(v * v, axis=-1, keepdims=True)

    @pl.when(s_idx == n_s - 1)
    def _():
        inv_n = 1.0 / s_valid
        gamma = gb_ref[:, 0:1]
        beta = gb_ref[:, 1:2]

        def fold(ssum, ssq, g, b):
            mean = ssum * inv_n
            var = jnp.maximum(ssq * inv_n - mean * mean, 0.0)
            scale = g * jax.lax.rsqrt(var + eps)
            return scale, b - mean * scale

        scale_u, shift_u = fold(su_sc[...], qu_sc[...], gamma[0:C4], beta[0:C4])
        scale_v, shift_v = fold(sv_sc[...], qv_sc[...],
                                gamma[C4:2 * C4], beta[C4:2 * C4])

        # Static unroll over the S tiles held in VMEM scratch.
        for t in range(n_s):
            yu = jnp.maximum(u_sc[t] * scale_u + shift_u, 0.0)
            yv = jnp.maximum(v_sc[t] * scale_v + shift_v, 0.0)
            ci = yu + yv                                   # (4C, St)
            f = jax.nn.sigmoid(ci[0:C])
            i = jax.nn.sigmoid(ci[C:2 * C])
            o = jax.nn.sigmoid(ci[2 * C:3 * C])
            g = jnp.tanh(ci[3 * C:4 * C])
            lo, hi = t * s_tile, (t + 1) * s_tile
            c_new = f * c_ref[0, :, lo:hi] + i * g
            h_ref[0, :, lo:hi] = o * jnp.tanh(c_new)
            c_out_ref[0, :, lo:hi] = c_new


# ---------------------------------------------------------------------------
# Wrapper: full ConvLSTMCell forward (conv_type='cba').
# ---------------------------------------------------------------------------
def _forward(x, hidden_state, cell_state, params, *, hidden_dim, eps=1e-5,
             s_tile=None):
    B, Cin, D, H, W = x.shape
    Ch = hidden_dim
    k = params["Wu"].shape[2]
    S = D * H * W
    C4 = 4 * Ch
    C8 = 8 * Ch

    # Big lane tiles amortize the ~0.35 us/step grid overhead; cap keeps the
    # resident f32 scratch + double-buffered bf16 patch tiles inside v7x's
    # 64 MiB VMEM.  TODO(synk): pick per-generation via pltpu.get_tpu_info and
    # fall back to a two-pass HBM scheme when 8C*S*4B no longer fits VMEM.
    if s_tile is None:
        s_tile = min(1024, _round_up(S, 128))
    Sp = _round_up(S, s_tile)
    nS = Sp // s_tile

    # im2col (XLA) + bf16 MXU operands; contraction dims zero-padded to
    # multiples of 128 for clean full systolic passes (exact: pads are zero).
    px = _im2col(x, k).astype(jnp.bfloat16)                 # [B, Kx, S]
    ph = _im2col(hidden_state, k).astype(jnp.bfloat16)      # [B, Kh, S]
    Kx, Kh = px.shape[1], ph.shape[1]
    Kxp, Khp = _round_up(Kx, 128), _round_up(Kh, 128)
    px = jnp.pad(px, ((0, 0), (0, Kxp - Kx), (0, Sp - S)))
    ph = jnp.pad(ph, ((0, 0), (0, Khp - Kh), (0, Sp - S)))

    wu = jnp.pad(params["Wu"].reshape(C4, Kx),
                 ((0, 0), (0, Kxp - Kx))).astype(jnp.bfloat16)
    wv = jnp.pad(params["Wv"].reshape(C4, Kh),
                 ((0, 0), (0, Khp - Kh))).astype(jnp.bfloat16)

    # Conv biases bu/bv are NOT passed to the kernel: InstanceNorm cancels
    # them exactly (the reference below keeps them, proving equivalence).
    gamma = jnp.concatenate([params["gamma_u"], params["gamma_v"]])
    beta = jnp.concatenate([params["beta_u"], params["beta_v"]])
    gb = jnp.stack([gamma, beta], axis=-1).astype(jnp.float32)   # [8C, 2]

    c_flat = cell_state.reshape(B, Ch, S).astype(jnp.float32)
    c_flat = jnp.pad(c_flat, ((0, 0), (0, 0), (0, Sp - S)))

    kernel = functools.partial(
        _convlstm_kernel, hidden_dim=Ch, s_valid=S, s_tile=s_tile, n_s=nS,
        eps=eps)

    # Advisory cost estimate for XLA scheduling around the custom call.
    flops = int(2 * B * C4 * (Kxp + Khp) * Sp + 12 * B * C8 * Sp)
    bytes_accessed = int((px.size + ph.size) * 2 + (wu.size + wv.size) * 2
                         + gb.size * 4 + 3 * B * Ch * Sp * 4)
    cost = pl.CostEstimate(flops=flops,
                           transcendentals=int(5 * B * Ch * Sp),
                           bytes_accessed=bytes_accessed)

    # VMEM budget: double-buffered bf16 patch tiles + bf16 weights + resident
    # f32 u/v scratch + resident c / h / c_new blocks (+50% headroom).
    vmem_est = (2 * 2 * (Kxp + Khp) * s_tile          # patch tiles, 2-buffered
                + 2 * 2 * C4 * (Kxp + Khp)            # weights (headroom x2)
                + 2 * C4 * Sp * 4 + 4 * C4 * 128 * 4  # u/v scratch + stats
                + 2 * 3 * Ch * Sp * 4)                # c in + h/c out blocks
    vmem_limit = int(min(max(32 * 2**20, int(vmem_est * 1.5)), 96 * 2**20))

    # NOTE(v7x): grid's only "parallel" axis is B; for B == 1 one of the two
    # TensorCores idles.  TODO(synk): split S with per-half partial statistics
    # reduced in a tiny epilogue to use both cores at B == 1.
    h_new, c_new = pl.pallas_call(
        kernel,
        out_shape=(jax.ShapeDtypeStruct((B, Ch, Sp), jnp.float32),
                   jax.ShapeDtypeStruct((B, Ch, Sp), jnp.float32)),
        grid=(B, nS),
        in_specs=[
            pl.BlockSpec((1, Kxp, s_tile), lambda b, s: (b, 0, s)),
            pl.BlockSpec((1, Khp, s_tile), lambda b, s: (b, 0, s)),
            pl.BlockSpec((C4, Kxp), lambda b, s: (0, 0)),
            pl.BlockSpec((C4, Khp), lambda b, s: (0, 0)),
            pl.BlockSpec((C8, 2), lambda b, s: (0, 0)),
            pl.BlockSpec((1, Ch, Sp), lambda b, s: (b, 0, 0)),
        ],
        out_specs=(pl.BlockSpec((1, Ch, Sp), lambda b, s: (b, 0, 0)),
                   pl.BlockSpec((1, Ch, Sp), lambda b, s: (b, 0, 0))),
        scratch_shapes=[
            pltpu.VMEM((nS, C4, s_tile), jnp.float32),   # U-branch activations
            pltpu.VMEM((nS, C4, s_tile), jnp.float32),   # V-branch activations
            pltpu.VMEM((C4, 1), jnp.float32),            # sum(U)
            pltpu.VMEM((C4, 1), jnp.float32),            # sum(U^2)
            pltpu.VMEM((C4, 1), jnp.float32),            # sum(V)
            pltpu.VMEM((C4, 1), jnp.float32),            # sum(V^2)
        ],
        input_output_aliases={5: 1},      # reuse cell-state buffer for c_new
        compiler_params=pltpu.CompilerParams(
            dimension_semantics=("parallel", "arbitrary"),
            vmem_limit_bytes=vmem_limit),
        cost_estimate=cost,
    )(px, ph, wu, wv, gb, c_flat)

    h_new = h_new[:, :, :S].reshape(B, Ch, D, H, W)
    c_new = c_new[:, :, :S].reshape(B, Ch, D, H, W)
    return h_new, c_new


conv_lstm_cell_forward = jax.jit(
    _forward, static_argnames=("hidden_dim", "eps", "s_tile"))


# ---------------------------------------------------------------------------
# Pure-JAX reference (same math, including the conv bias that the kernel drops
# because InstanceNorm cancels it; conv operands cast to bf16 to match the
# kernel's bf16-operand / f32-accumulate matmuls).
# ---------------------------------------------------------------------------
def _reference_forward(x, h, c, params, *, hidden_dim, eps=1e-5):
    def conv(t, w, b):
        out = jax.lax.conv_general_dilated(
            t.astype(jnp.bfloat16), w.astype(jnp.bfloat16),
            window_strides=(1, 1, 1), padding="SAME",
            dimension_numbers=("NCDHW", "OIDHW", "NCDHW"),
            preferred_element_type=jnp.float32)
        return out + b.reshape(1, -1, 1, 1, 1)

    def inorm_relu(t, gamma, beta):
        mean = jnp.mean(t, axis=(2, 3, 4), keepdims=True)
        var = jnp.mean((t - mean) ** 2, axis=(2, 3, 4), keepdims=True)
        y = (t - mean) * jax.lax.rsqrt(var + eps)
        y = y * gamma.reshape(1, -1, 1, 1, 1) + beta.reshape(1, -1, 1, 1, 1)
        return jnp.maximum(y, 0.0)

    cu = inorm_relu(conv(x, params["Wu"], params["bu"]),
                    params["gamma_u"], params["beta_u"])
    cv = inorm_relu(conv(h, params["Wv"], params["bv"]),
                    params["gamma_v"], params["beta_v"])
    ci = cu + cv
    C = hidden_dim
    f = jax.nn.sigmoid(ci[:, 0:C])
    i = jax.nn.sigmoid(ci[:, C:2 * C])
    o = jax.nn.sigmoid(ci[:, 2 * C:3 * C])
    g = jnp.tanh(ci[:, 3 * C:4 * C])
    c_new = f * c + i * g
    h_new = o * jnp.tanh(c_new)
    return h_new, c_new


if __name__ == "__main__":
    # Small shapes consistent with the module's forward.
    B, Cin, Ch = 2, 4, 8          # batch, input_dim, hidden_dim
    D, H, W = 4, 8, 8             # depth, height, width (S = 256)
    k = 3

    key = jax.random.PRNGKey(0)
    kx, kh, kc, kwu, kbu, kwv, kbv = jax.random.split(key, 7)

    x = jax.random.normal(kx, (B, Cin, D, H, W), jnp.float32)
    h0 = jax.random.normal(kh, (B, Ch, D, H, W), jnp.float32)
    c0 = jax.random.normal(kc, (B, Ch, D, H, W), jnp.float32)

    # Deterministic parameter init (matches torch shapes):
    #   Conv3d weights: kaiming_normal_(fan_out, relu) -> std = sqrt(2/(out*k^3))
    #   Conv3d bias:    uniform(-1/sqrt(fan_in), 1/sqrt(fan_in))
    #   InstanceNorm3d affine: gamma=1, beta=0
    N4 = 4 * Ch
    std = (2.0 / (N4 * k ** 3)) ** 0.5
    bound_u = 1.0 / (Cin * k ** 3) ** 0.5
    bound_v = 1.0 / (Ch * k ** 3) ** 0.5
    params = {
        "Wu": jax.random.normal(kwu, (N4, Cin, k, k, k), jnp.float32) * std,
        "bu": jax.random.uniform(kbu, (N4,), jnp.float32, -bound_u, bound_u),
        "Wv": jax.random.normal(kwv, (N4, Ch, k, k, k), jnp.float32) * std,
        "bv": jax.random.uniform(kbv, (N4,), jnp.float32, -bound_v, bound_v),
        "gamma_u": jnp.ones((N4,), jnp.float32),
        "beta_u": jnp.zeros((N4,), jnp.float32),
        "gamma_v": jnp.ones((N4,), jnp.float32),
        "beta_v": jnp.zeros((N4,), jnp.float32),
    }

    h_new, c_new = conv_lstm_cell_forward(x, h0, c0, params, hidden_dim=Ch)
    jax.block_until_ready((h_new, c_new))

    h_ref, c_ref = _reference_forward(x, h0, c0, params, hidden_dim=Ch)
    assert jnp.allclose(h_new, h_ref, atol=1e-3, rtol=1e-3), "hidden mismatch"
    assert jnp.allclose(c_new, c_ref, atol=1e-3, rtol=1e-3), "cell mismatch"

    print("KERNEL_OK")
</pallas_src>

<mosaic_0001>
module attributes {stable_mosaic.version = 11 : i64} {
  func.func @_convlstm_kernel(%arg0: i32, %arg1: i32, %arg2: memref<1x128x256xbf16, #tpu.memory_space<vmem>>, %arg3: memref<1x256x256xbf16, #tpu.memory_space<vmem>>, %arg4: memref<32x128xbf16, #tpu.memory_space<vmem>>, %arg5: memref<32x256xbf16, #tpu.memory_space<vmem>>, %arg6: memref<64x2xf32, #tpu.memory_space<vmem>>, %arg7: memref<1x8x256xf32, #tpu.memory_space<vmem>>, %arg8: memref<1x8x256xf32, #tpu.memory_space<vmem>>, %arg9: memref<1x8x256xf32, #tpu.memory_space<vmem>>, %arg10: memref<1x32x256xf32, #tpu.memory_space<vmem>>, %arg11: memref<1x32x256xf32, #tpu.memory_space<vmem>>, %arg12: memref<32x1xf32, #tpu.memory_space<vmem>>, %arg13: memref<32x1xf32, #tpu.memory_space<vmem>>, %arg14: memref<32x1xf32, #tpu.memory_space<vmem>>, %arg15: memref<32x1xf32, #tpu.memory_space<vmem>>) attributes {dimension_semantics = [#tpu.dimension_semantics<parallel>, #tpu.dimension_semantics<arbitrary>], iteration_bounds = array<i64: 2, 1>, scalar_prefetch = 0 : i64, scratch_operands = 6 : i64, tpu.core_type = #tpu.core_type<tc>, window_params = [{transform_indices = @transform_0, window_bounds = array<i64: 1, 128, 256>}, {transform_indices = @transform_1, window_bounds = array<i64: 1, 256, 256>}, {pipeline_mode = #tpu.pipeline_mode<synchronous>, transform_indices = @transform_2, window_bounds = array<i64: 32, 128>}, {pipeline_mode = #tpu.pipeline_mode<synchronous>, transform_indices = @transform_3, window_bounds = array<i64: 32, 256>}, {pipeline_mode = #tpu.pipeline_mode<synchronous>, transform_indices = @transform_4, window_bounds = array<i64: 64, 2>}, {transform_indices = @transform_5, window_bounds = array<i64: 1, 8, 256>}, {transform_indices = @transform_6, window_bounds = array<i64: 1, 8, 256>}, {transform_indices = @transform_7, window_bounds = array<i64: 1, 8, 256>}]} {
    %c0_i32 = arith.constant 0 : i32
    %0 = arith.cmpi eq, %arg1, %c0_i32 : i32
    %1 = arith.extui %0 : i1 to i32
    %c0_i32_0 = arith.constant 0 : i32
    %2 = arith.cmpi ne, %1, %c0_i32_0 : i32
    scf.if %2 {
      %cst_37 = arith.constant 0.000000e+00 : f32
      %44 = vector.broadcast %cst_37 : f32 to vector<32x1xf32>
      %c0_38 = arith.constant 0 : index
      %c0_39 = arith.constant 0 : index
      %45 = vector.load %arg12[%c0_38, %c0_39] : memref<32x1xf32, #tpu.memory_space<vmem>>, vector<32x1xf32>
      tpu.vector_store %arg12[%c0_38, %c0_39], %44 {strides = array<i32>} : memref<32x1xf32, #tpu.memory_space<vmem>>, vector<32x1xf32>,
      %cst_40 = arith.constant 0.000000e+00 : f32
      %46 = vector.broadcast %cst_40 : f32 to vector<32x1xf32>
      %c0_41 = arith.constant 0 : index
      %c0_42 = arith.constant 0 : index
      %47 = vector.load %arg13[%c0_41, %c0_42] : memref<32x1xf32, #tpu.memory_space<vmem>>, vector<32x1xf32>
      tpu.vector_store %arg13[%c0_41, %c0_42], %46 {strides = array<i32>} : memref<32x1xf32, #tpu.memory_space<vmem>>, vector<32x1xf32>,
      %cst_43 = arith.constant 0.000000e+00 : f32
      %48 = vector.broadcast %cst_43 : f32 to vector<32x1xf32>
      %c0_44 = arith.constant 0 : index
      %c0_45 = arith.constant 0 : index
      %49 = vector.load %arg14[%c0_44, %c0_45] : memref<32x1xf32, #tpu.memory_space<vmem>>, vector<32x1xf32>
      tpu.vector_store %arg14[%c0_44, %c0_45], %48 {strides = array<i32>} : memref<32x1xf32, #tpu.memory_space<vmem>>, vector<32x1xf32>,
      %cst_46 = arith.constant 0.000000e+00 : f32
      %50 = vector.broadcast %cst_46 : f32 to vector<32x1xf32>
      %c0_47 = arith.constant 0 : index
      %c0_48 = arith.constant 0 : index
      %51 = vector.load %arg15[%c0_47, %c0_48] : memref<32x1xf32, #tpu.memory_space<vmem>>, vector<32x1xf32>
      tpu.vector_store %arg15[%c0_47, %c0_48], %50 {strides = array<i32>} : memref<32x1xf32, #tpu.memory_space<vmem>>, vector<32x1xf32>,
    } else {
    }
    %c0 = arith.constant 0 : index
    %c0_1 = arith.constant 0 : index
    %3 = vector.load %arg4[%c0, %c0_1] : memref<32x128xbf16, #tpu.memory_space<vmem>>, vector<32x128xbf16>
    %c0_2 = arith.constant 0 : index
    %c0_3 = arith.constant 0 : index
    %c0_4 = arith.constant 0 : index
    %4 = vector.load %arg2[%c0_2, %c0_3, %c0_4] : memref<1x128x256xbf16, #tpu.memory_space<vmem>>, vector<1x128x256xbf16>
    %5 = vector.shape_cast %4 : vector<1x128x256xbf16> to vector<128x256xbf16>
    %cst = arith.constant dense<0.000000e+00> : vector<32x256xf32>
    %6 = tpu.matmul %3, %5, %cst {dimension_numbers = #tpu.dot_dimension_numbers<[1], [0], [0], [1], [0, 0, 1, 1], [], []>} : vector<32x128xbf16>, vector<128x256xbf16>, vector<32x256xf32> -> vector<32x256xf32>
    %c0_5 = arith.constant 0 : index
    %c0_6 = arith.constant 0 : index
    %7 = vector.load %arg5[%c0_5, %c0_6] : memref<32x256xbf16, #tpu.memory_space<vmem>>, vector<32x256xbf16>
    %c0_7 = arith.constant 0 : index
    %c0_8 = arith.constant 0 : index
    %c0_9 = arith.constant 0 : index
    %8 = vector.load %arg3[%c0_7, %c0_8, %c0_9] : memref<1x256x256xbf16, #tpu.memory_space<vmem>>, vector<1x256x256xbf16>
    %9 = vector.shape_cast %8 : vector<1x256x256xbf16> to vector<256x256xbf16>
    %cst_10 = arith.constant dense<0.000000e+00> : vector<32x256xf32>
    %10 = tpu.matmul %7, %9, %cst_10 {dimension_numbers = #tpu.dot_dimension_numbers<[1], [0], [0], [1], [0, 0, 1, 1], [], []>} : vector<32x256xbf16>, vector<256x256xbf16>, vector<32x256xf32> -> vector<32x256xf32>
    %11 = arith.index_cast %arg1 : i32 to index
    %c0_11 = arith.constant 0 : index
    %c0_12 = arith.constant 0 : index
    %12 = vector.load %arg10[%11, %c0_11, %c0_12] : memref<1x32x256xf32, #tpu.memory_space<vmem>>, vector<1x32x256xf32>
    %13 = vector.shape_cast %12 : vector<1x32x256xf32> to vector<32x256xf32>
    %14 = vector.shape_cast %6 : vector<32x256xf32> to vector<1x32x256xf32>
    tpu.vector_store %arg10[%11, %c0_11, %c0_12], %14 {strides = array<i32>} : memref<1x32x256xf32, #tpu.memory_space<vmem>>, vector<1x32x256xf32>,
    %15 = arith.index_cast %arg1 : i32 to index
    %c0_13 = arith.constant 0 : index
    %c0_14 = arith.constant 0 : index
    %16 = vector.load %arg11[%15, %c0_13, %c0_14] : memref<1x32x256xf32, #tpu.memory_space<vmem>>, vector<1x32x256xf32>
    %17 = vector.shape_cast %16 : vector<1x32x256xf32> to vector<32x256xf32>
    %18 = vector.shape_cast %10 : vector<32x256xf32> to vector<1x32x256xf32>
    tpu.vector_store %arg11[%15, %c0_13, %c0_14], %18 {strides = array<i32>} : memref<1x32x256xf32, #tpu.memory_space<vmem>>, vector<1x32x256xf32>,
    %c0_15 = arith.constant 0 : index
    %c0_16 = arith.constant 0 : index
    %19 = vector.load %arg12[%c0_15, %c0_16] : memref<32x1xf32, #tpu.memory_space<vmem>>, vector<32x1xf32>
    %cst_17 = arith.constant dense<0.000000e+00> : vector<32xf32>
    %20 = vector.multi_reduction <add>, %6, %cst_17 [1] : vector<32x256xf32> to vector<32xf32>
    %21 = vector.shape_cast %20 : vector<32xf32> to vector<32x1xf32>
    %22 = arith.addf %19, %21 : vector<32x1xf32>
    %c0_18 = arith.constant 0 : index
    %c0_19 = arith.constant 0 : index
    %23 = vector.load %arg12[%c0_18, %c0_19] : memref<32x1xf32, #tpu.memory_space<vmem>>, vector<32x1xf32>
    tpu.vector_store %arg12[%c0_18, %c0_19], %22 {strides = array<i32>} : memref<32x1xf32, #tpu.memory_space<vmem>>, vector<32x1xf32>,
    %c0_20 = arith.constant 0 : index
    %c0_21 = arith.constant 0 : index
    %24 = vector.load %arg13[%c0_20, %c0_21] : memref<32x1xf32, #tpu.memory_space<vmem>>, vector<32x1xf32>
    %25 = arith.mulf %6, %6 : vector<32x256xf32>
    %cst_22 = arith.constant dense<0.000000e+00> : vector<32xf32>
    %26 = vector.multi_reduction <add>, %25, %cst_22 [1] : vector<32x256xf32> to vector<32xf32>
    %27 = vector.shape_cast %26 : vector<32xf32> to vector<32x1xf32>
    %28 = arith.addf %24, %27 : vector<32x1xf32>
    %c0_23 = arith.constant 0 : index
    %c0_24 = arith.constant 0 : index
    %29 = vector.load %arg13[%c0_23, %c0_24] : memref<32x1xf32, #tpu.memory_space<vmem>>, vector<32x1xf32>
    tpu.vector_store %arg13[%c0_23, %c0_24], %28 {strides = array<i32>} : memref<32x1xf32, #tpu.memory_space<vmem>>, vector<32x1xf32>,
    %c0_25 = arith.constant 0 : index
    %c0_26 = arith.constant 0 : index
    %30 = vector.load %arg14[%c0_25, %c0_26] : memref<32x1xf32, #tpu.memory_space<vmem>>, vector<32x1xf32>
    %cst_27 = arith.constant dense<0.000000e+00> : vector<32xf32>
    %31 = vector.multi_reduction <add>, %10, %cst_27 [1] : vector<32x256xf32> to vector<32xf32>
    %32 = vector.shape_cast %31 : vector<32xf32> to vector<32x1xf32>
    %33 = arith.addf %30, %32 : vector<32x1xf32>
    %c0_28 = arith.constant 0 : index
    %c0_29 = arith.constant 0 : index
    %34 = vector.load %arg14[%c0_28, %c0_29] : memref<32x1xf32, #tpu.memory_space<vmem>>, vector<32x1xf32>
    tpu.vector_store %arg14[%c0_28, %c0_29], %33 {strides = array<i32>} : memref<32x1xf32, #tpu.memory_space<vmem>>, vector<32x1xf32>,
    %c0_30 = arith.constant 0 : index
    %c0_31 = arith.constant 0 : index
    %35 = vector.load %arg15[%c0_30, %c0_31] : memref<32x1xf32, #tpu.memory_space<vmem>>, vector<32x1xf32>
    %36 = arith.mulf %10, %10 : vector<32x256xf32>
    %cst_32 = arith.constant dense<0.000000e+00> : vector<32xf32>
    %37 = vector.multi_reduction <add>, %36, %cst_32 [1] : vector<32x256xf32> to vector<32xf32>
    %38 = vector.shape_cast %37 : vector<32xf32> to vector<32x1xf32>
    %39 = arith.addf %35, %38 : vector<32x1xf32>
    %c0_33 = arith.constant 0 : index
    %c0_34 = arith.constant 0 : index
    %40 = vector.load %arg15[%c0_33, %c0_34] : memref<32x1xf32, #tpu.memory_space<vmem>>, vector<32x1xf32>
    tpu.vector_store %arg15[%c0_33, %c0_34], %39 {strides = array<i32>} : memref<32x1xf32, #tpu.memory_space<vmem>>, vector<32x1xf32>,
    %c0_i32_35 = arith.constant 0 : i32
    %41 = arith.cmpi eq, %arg1, %c0_i32_35 : i32
    %42 = arith.extui %41 : i1 to i32
    %c0_i32_36 = arith.constant 0 : i32
    %43 = arith.cmpi ne, %42, %c0_i32_36 : i32
    scf.if %43 {
      %c0_37 = arith.constant 0 : index
      %c0_38 = arith.constant 0 : index
      %44 = vector.load %arg6[%c0_37, %c0_38] : memref<64x2xf32, #tpu.memory_space<vmem>>, vector<64x1xf32>
      %c0_39 = arith.constant 0 : index
      %c1 = arith.constant 1 : index
      %45 = vector.load %arg6[%c0_39, %c1] : memref<64x2xf32, #tpu.memory_space<vmem>>, vector<64x1xf32>
      %c0_40 = arith.constant 0 : index
      %c0_41 = arith.constant 0 : index
      %46 = vector.load %arg12[%c0_40, %c0_41] : memref<32x1xf32, #tpu.memory_space<vmem>>, vector<32x1xf32>
      %c0_42 = arith.constant 0 : index
      %c0_43 = arith.constant 0 : index
      %47 = vector.load %arg13[%c0_42, %c0_43] : memref<32x1xf32, #tpu.memory_space<vmem>>, vector<32x1xf32>
      %48 = vector.extract_strided_slice %44 {offsets = [0, 0], sizes = [32, 1], strides = [1, 1]} : vector<64x1xf32> to vector<32x1xf32>
      %49 = vector.extract_strided_slice %45 {offsets = [0, 0], sizes = [32, 1], strides = [1, 1]} : vector<64x1xf32> to vector<32x1xf32>
      %cst_44 = arith.constant 3.906250e-03 : f32
      %50 = vector.broadcast %cst_44 : f32 to vector<32x1xf32>
      %51 = arith.mulf %46, %50 : vector<32x1xf32>
      %cst_45 = arith.constant 3.906250e-03 : f32
      %52 = vector.broadcast %cst_45 : f32 to vector<32x1xf32>
      %53 = arith.mulf %47, %52 : vector<32x1xf32>
      %54 = arith.mulf %51, %51 : vector<32x1xf32>
      %55 = arith.subf %53, %54 : vector<32x1xf32>
      %cst_46 = arith.constant 0.000000e+00 : f32
      %56 = vector.broadcast %cst_46 : f32 to vector<32x1xf32>
      %57 = arith.maximumf %55, %56 : vector<32x1xf32>
      %cst_47 = arith.constant 9.99999974E-6 : f32
      %58 = vector.broadcast %cst_47 : f32 to vector<32x1xf32>
      %59 = arith.addf %57, %58 : vector<32x1xf32>
      %60 = math.rsqrt %59 : vector<32x1xf32>
      %61 = arith.mulf %48, %60 : vector<32x1xf32>
      %62 = arith.mulf %51, %61 : vector<32x1xf32>
      %63 = arith.subf %49, %62 : vector<32x1xf32>
      %c0_48 = arith.constant 0 : index
      %c0_49 = arith.constant 0 : index
      %64 = vector.load %arg14[%c0_48, %c0_49] : memref<32x1xf32, #tpu.memory_space<vmem>>, vector<32x1xf32>
      %c0_50 = arith.constant 0 : index
      %c0_51 = arith.constant 0 : index
      %65 = vector.load %arg15[%c0_50, %c0_51] : memref<32x1xf32, #tpu.memory_space<vmem>>, vector<32x1xf32>
      %66 = vector.extract_strided_slice %44 {offsets = [32, 0], sizes = [32, 1], strides = [1, 1]} : vector<64x1xf32> to vector<32x1xf32>
      %67 = vector.extract_strided_slice %45 {offsets = [32, 0], sizes = [32, 1], strides = [1, 1]} : vector<64x1xf32> to vector<32x1xf32>
      %cst_52 = arith.constant 3.906250e-03 : f32
      %68 = vector.broadcast %cst_52 : f32 to vector<32x1xf32>
      %69 = arith.mulf %64, %68 : vector<32x1xf32>
      %cst_53 = arith.constant 3.906250e-03 : f32
      %70 = vector.broadcast %cst_53 : f32 to vector<32x1xf32>
      %71 = arith.mulf %65, %70 : vector<32x1xf32>
      %72 = arith.mulf %69, %69 : vector<32x1xf32>
      %73 = arith.subf %71, %72 : vector<32x1xf32>
      %cst_54 = arith.constant 0.000000e+00 : f32
      %74 = vector.broadcast %cst_54 : f32 to vector<32x1xf32>
      %75 = arith.maximumf %73, %74 : vector<32x1xf32>
      %cst_55 = arith.constant 9.99999974E-6 : f32
      %76 = vector.broadcast %cst_55 : f32 to vector<32x1xf32>
      %77 = arith.addf %75, %76 : vector<32x1xf32>
      %78 = math.rsqrt %77 : vector<32x1xf32>
      %79 = arith.mulf %66, %78 : vector<32x1xf32>
      %80 = arith.mulf %69, %79 : vector<32x1xf32>
      %81 = arith.subf %67, %80 : vector<32x1xf32>
      %c0_56 = arith.constant 0 : index
      %c0_57 = arith.constant 0 : index
      %c0_58 = arith.constant 0 : index
      %82 = vector.load %arg10[%c0_56, %c0_57, %c0_58] : memref<1x32x256xf32, #tpu.memory_space<vmem>>, vector<1x32x256xf32>
      %83 = vector.shape_cast %82 : vector<1x32x256xf32> to vector<32x256xf32>
      %84 = vector.broadcast %61 : vector<32x1xf32> to vector<32x256xf32>
      %85 = arith.mulf %83, %84 : vector<32x256xf32>
      %86 = vector.broadcast %63 : vector<32x1xf32> to vector<32x256xf32>
      %87 = arith.addf %85, %86 : vector<32x256xf32>
      %cst_59 = arith.constant 0.000000e+00 : f32
      %88 = vector.broadcast %cst_59 : f32 to vector<32x256xf32>
      %89 = arith.maximumf %87, %88 : vector<32x256xf32>
      %c0_60 = arith.constant 0 : index
      %c0_61 = arith.constant 0 : index
      %c0_62 = arith.constant 0 : index
      %90 = vector.load %arg11[%c0_60, %c0_61, %c0_62] : memref<1x32x256xf32, #tpu.memory_space<vmem>>, vector<1x32x256xf32>
      %91 = vector.shape_cast %90 : vector<1x32x256xf32> to vector<32x256xf32>
      %92 = vector.broadcast %79 : vector<32x1xf32> to vector<32x256xf32>
      %93 = arith.mulf %91, %92 : vector<32x256xf32>
      %94 = vector.broadcast %81 : vector<32x1xf32> to vector<32x256xf32>
      %95 = arith.addf %93, %94 : vector<32x256xf32>
      %cst_63 = arith.constant 0.000000e+00 : f32
      %96 = vector.broadcast %cst_63 : f32 to vector<32x256xf32>
      %97 = arith.maximumf %95, %96 : vector<32x256xf32>
      %98 = arith.addf %89, %97 : vector<32x256xf32>
      %99 = vector.extract_strided_slice %98 {offsets = [0, 0], sizes = [8, 256], strides = [1, 1]} : vector<32x256xf32> to vector<8x256xf32>
      %100 = arith.negf %99 : vector<8x256xf32>
      %101 = math.exp %100 : vector<8x256xf32>
      %cst_64 = arith.constant 1.000000e+00 : f32
      %102 = vector.broadcast %cst_64 : f32 to vector<8x256xf32>
      %103 = arith.addf %102, %101 : vector<8x256xf32>
      %104 = arith.divf %102, %103 : vector<8x256xf32>
      %105 = vector.extract_strided_slice %98 {offsets = [8, 0], sizes = [8, 256], strides = [1, 1]} : vector<32x256xf32> to vector<8x256xf32>
      %106 = arith.negf %105 : vector<8x256xf32>
      %107 = math.exp %106 : vector<8x256xf32>
      %cst_65 = arith.constant 1.000000e+00 : f32
      %108 = vector.broadcast %cst_65 : f32 to vector<8x256xf32>
      %109 = arith.addf %108, %107 : vector<8x256xf32>
      %110 = arith.divf %108, %109 : vector<8x256xf32>
      %111 = vector.extract_strided_slice %98 {offsets = [16, 0], sizes = [8, 256], strides = [1, 1]} : vector<32x256xf32> to vector<8x256xf32>
      %112 = arith.negf %111 : vector<8x256xf32>
      %113 = math.exp %112 : vector<8x256xf32>
      %cst_66 = arith.constant 1.000000e+00 : f32
      %114 = vector.broadcast %cst_66 : f32 to vector<8x256xf32>
      %115 = arith.addf %114, %113 : vector<8x256xf32>
      %116 = arith.divf %114, %115 : vector<8x256xf32>
      %117 = vector.extract_strided_slice %98 {offsets = [24, 0], sizes = [8, 256], strides = [1, 1]} : vector<32x256xf32> to vector<8x256xf32>
      %118 = math.tanh %117 : vector<8x256xf32>
      %c0_67 = arith.constant 0 : index
      %c0_68 = arith.constant 0 : index
      %c0_69 = arith.constant 0 : index
      %119 = vector.load %arg7[%c0_67, %c0_68, %c0_69] : memref<1x8x256xf32, #tpu.memory_space<vmem>>, vector<1x8x256xf32>
      %120 = vector.shape_cast %119 : vector<1x8x256xf32> to vector<8x256xf32>
      %121 = arith.mulf %104, %120 : vector<8x256xf32>
      %122 = arith.mulf %110, %118 : vector<8x256xf32>
      %123 = arith.addf %121, %122 : vector<8x256xf32>
      %124 = math.tanh %123 : vector<8x256xf32>
      %125 = arith.mulf %116, %124 : vector<8x256xf32>
      %c0_70 = arith.constant 0 : index
      %c0_71 = arith.constant 0 : index
      %c0_72 = arith.constant 0 : index
      %126 = vector.load %arg8[%c0_70, %c0_71, %c0_72] : memref<1x8x256xf32, #tpu.memory_space<vmem>>, vector<1x8x256xf32>
      %127 = vector.shape_cast %126 : vector<1x8x256xf32> to vector<8x256xf32>
      %128 = vector.shape_cast %125 : vector<8x256xf32> to vector<1x8x256xf32>
      tpu.vector_store %arg8[%c0_70, %c0_71, %c0_72], %128 {strides = array<i32>} : memref<1x8x256xf32, #tpu.memory_space<vmem>>, vector<1x8x256xf32>,
      %c0_73 = arith.constant 0 : index
      %c0_74 = arith.constant 0 : index
      %c0_75 = arith.constant 0 : index
      %129 = vector.load %arg9[%c0_73, %c0_74, %c0_75] : memref<1x8x256xf32, #tpu.memory_space<vmem>>, vector<1x8x256xf32>
      %130 = vector.shape_cast %129 : vector<1x8x256xf32> to vector<8x256xf32>
      %131 = vector.shape_cast %123 : vector<8x256xf32> to vector<1x8x256xf32>
      tpu.vector_store %arg9[%c0_73, %c0_74, %c0_75], %131 {strides = array<i32>} : memref<1x8x256xf32, #tpu.memory_space<vmem>>, vector<1x8x256xf32>,
    } else {
    }
    return
  }
  func.func @transform_0(%arg0: i32, %arg1: i32) -> (i32, i32, i32) {
    %c0_i32 = arith.constant 0 : i32
    %c0_i32_0 = arith.constant 0 : i32
    return %arg0, %c0_i32, %arg1 : i32, i32, i32
  }
  func.func @transform_1(%arg0: i32, %arg1: i32) -> (i32, i32, i32) {
    %c0_i32 = arith.constant 0 : i32
    %c0_i32_0 = arith.constant 0 : i32
    return %arg0, %c0_i32, %arg1 : i32, i32, i32
  }
  func.func @transform_2(%arg0: i32, %arg1: i32) -> (i32, i32) {
    %c0_i32 = arith.constant 0 : i32
    %c0_i32_0 = arith.constant 0 : i32
    %c0_i32_1 = arith.constant 0 : i32
    return %c0_i32, %c0_i32_0 : i32, i32
  }
  func.func @transform_3(%arg0: i32, %arg1: i32) -> (i32, i32) {
    %c0_i32 = arith.constant 0 : i32
    %c0_i32_0 = arith.constant 0 : i32
    %c0_i32_1 = arith.constant 0 : i32
    return %c0_i32, %c0_i32_0 : i32, i32
  }
  func.func @transform_4(%arg0: i32, %arg1: i32) -> (i32, i32) {
    %c0_i32 = arith.constant 0 : i32
    %c0_i32_0 = arith.constant 0 : i32
    %c0_i32_1 = arith.constant 0 : i32
    return %c0_i32, %c0_i32_0 : i32, i32
  }
  func.func @transform_5(%arg0: i32, %arg1: i32) -> (i32, i32, i32) {
    %c0_i32 = arith.constant 0 : i32
    %c0_i32_0 = arith.constant 0 : i32
    %c0_i32_1 = arith.constant 0 : i32
    return %arg0, %c0_i32, %c0_i32_0 : i32, i32, i32
  }
  func.func @transform_6(%arg0: i32, %arg1: i32) -> (i32, i32, i32) {
    %c0_i32 = arith.constant 0 : i32
    %c0_i32_0 = arith.constant 0 : i32
    %c0_i32_1 = arith.constant 0 : i32
    return %arg0, %c0_i32, %c0_i32_0 : i32, i32, i32
  }
  func.func @transform_7(%arg0: i32, %arg1: i32) -> (i32, i32, i32) {
    %c0_i32 = arith.constant 0 : i32
    %c0_i32_0 = arith.constant 0 : i32
    %c0_i32_1 = arith.constant 0 : i32
    return %arg0, %c0_i32, %c0_i32_0 : i32, i32, i32
  }
}

</mosaic_0001>

<bundles_post_ra>
// kernel: _forward.1
= control target key start
LH: loop header
LB: loop body
LE: loop exit
PB: predicated region body
PF: predicated region fallthrough
CT: control target
= control target key end

     0   :  { %s2074_s24 = smov 0   ;;  %s2076_s25 = smov 0   ;;  %s2606_s0 = inlined_call_operand.vmem [shape: bf16[2,128,256], index: 0, kind: input, shape index: {}]   ;;  %s2607_s1 = inlined_call_operand.vmem [shape: bf16[2,256,256], index: 1, kind: input, shape index: {}]   ;;  %s2608_s2 = inlined_call_operand.vmem [shape: bf16[32,128], index: 2, kind: input, shape index: {}]   ;;  %s2609_s3 = inlined_call_operand.vmem [shape: bf16[32,256], index: 3, kind: input, shape index: {}]   ;;  %s2610_s4 = inlined_call_operand.vmem [shape: f32[64,2], index: 4, kind: input, shape index: {}]   ;;  %s2611_s5 = inlined_call_operand.vmem [shape: f32[2,8,256], index: 5, kind: input, shape index: {}, may-alias: {5,7}]   ;;  %s2612_s6 = inlined_call_operand.vmem [shape: f32[2,8,256], index: 6, kind: output, shape index: {0}]   ;;  %s2613_s7 = inlined_call_operand.vmem [shape: f32[2,8,256], index: 7, kind: output, shape index: {1}, may-alias: {5,7}]  }
   0x1   :  { %s2078_s26 = smov 0  }
   0x2 LB: > { %s30_s27 = sadd.s32 1, %s2024_s25  ;;  %p1608_p0 = scmp.ge.s32.totalorder %s2028_s26, 1  ;;  %s2028_s26 = sphi %s2078_s26, %s18_s26   ;;  %s2024_s25 = sphi %s2076_s25, %s2623_s25   ;;  %s2020_s24 = sphi %s2074_s24, %s2622_s24  }
   0x3   : > { %p32_p1 = scmp.ge.s32.totalorder %s30_s27, 2  ;;  %p286_p2 = scmp.lt.s32.totalorder %s2028_s26, 3 }
   0x5   : > { %s2625_s27 = smov (%p32_p1, %s30_s27), 0  ;;  %p287_p3 = pnand %p1608_p0, %p286_p2 }
   0x6   : > { %p342_p4 = scmp.lt.s32.totalorder (!%p287_p3), %s2020_s24, 1  ;;  %s2031_s16 = smov (!%p287_p3), 1  }
   0x7   : > { %290 = sbr.rel (%p287_p3) target bundleno = 665 (0x299), region = 44 }
   0xc   : > { %s2627_s24 = smov (!%p342_p4, %s2020_s24), 1  ;;  %vm380_vm0 = vcmask 7168  }
   0xd   : > { %s1843_s28 = sshll.u32 %s2627_s24, 7  ;;  %s1844_s29 = sshll.u32 %s2627_s24, 8 }
   0xe   : > { %s2099_s9 = scalar_lea.vmem %s2606_s0, %s1843_s28  ;;  %s2104_s12 = scalar_lea.vmem %s2607_s1, %s1844_s29 }
   0xf   : > { %v1685_v0 = vld [vmem:[%s2099_s9 + $0x70] sm:$0xf]  ;;  %v1865_v1 = vld [vmem:[%s2099_s9 + $0x74] sm:$0xf0]  ;;  %v1864_v2 = vld [vmem:[%s2099_s9 + $0x74] sm:$0xf] }
  0x10   : > { %v1686_v3 = vor.u32 %v1865_v1, %v1685_v0  ;;  %v1687_v4 = vld [vmem:[%s2099_s9 + $0x78] sm:$0xf0]  ;;  %v1765_v5 = vld [vmem:[%s2104_s12 + $0x70] sm:$0xf]  ;;  %v1885_v6 = vld [vmem:[%s2104_s12 + $0x74] sm:$0xf0] }
  0x11   : > { %v1690_v7 = vor.u32 %v1864_v2, %v1687_v4  ;;  %v1766_v8 = vor.u32 %v1885_v6, %v1765_v5  ;;  %v1829_v9 = vld [vmem:[%s2104_s12 + $0xf0] sm:$0xf]  ;;  %v1901_v10 = vld [vmem:[%s2104_s12 + $0xf4] sm:$0xf0]  ;;  %v1677_v11 = vld [vmem:[%s2099_s9 + $0x60] sm:$0xf] }
  0x12   : > { %509 = vmatpush.bf16.msra.mxu0 %v1686_v3  ;;  %v1830_v12 = vor.u32 %v1901_v10, %v1829_v9  ;;  %v1863_v13 = vld [vmem:[%s2099_s9 + $0x64] sm:$0xf0]  ;;  %v1862_v14 = vld [vmem:[%s2099_s9 + $0x64] sm:$0xf]  ;;  %v1679_v15 = vld [vmem:[%s2099_s9 + $0x68] sm:$0xf0] }
  0x13   : > { %528 = vmatpush.bf16.msra.mxu1 %v1690_v7  ;;  %763 = vmatpush.bf16.msra.mxu2 %v1766_v8  ;;  %v1678_v16 = vor.u32 %v1863_v13, %v1677_v11  ;;  %v1682_v17 = vor.u32 %v1862_v14, %v1679_v15  ;;  %v1757_v18 = vld [vmem:[%s2104_s12 + $0x60] sm:$0xf]  ;;  %v1883_v19 = vld [vmem:[%s2104_s12 + $0x64] sm:$0xf0]  ;;  %v1669_v23 = vld [vmem:[%s2099_s9 + $0x50] sm:$0xf] }
  0x14   : > { %v1821_v20 = vld [vmem:[%s2104_s12 + $0xe0] sm:$0xf]  ;;  %782 = vmatpush.bf16.msra.mxu3 %v1830_v12  ;;  %v1758_v21 = vor.u32 %v1883_v19, %v1757_v18  ;;  %v1899_v22 = vld [vmem:[%s2104_s12 + $0xe4] sm:$0xf0]  ;;  %v1861_v24 = vld [vmem:[%s2099_s9 + $0x54] sm:$0xf0] }
  0x15   : > { %v1822_v25 = vor.u32 %v1899_v22, %v1821_v20  ;;  %v1860_v26 = vld [vmem:[%s2099_s9 + $0x54] sm:$0xf]  ;;  %v1671_v27 = vld [vmem:[%s2099_s9 + $0x58] sm:$0xf0]  ;;  %v1749_v28 = vld [vmem:[%s2104_s12 + $0x50] sm:$0xf]  ;;  %v1670_v29 = vor.u32 %v1861_v24, %v1669_v23 }
  0x16   : > { %510 = vmatpush.bf16.msra.mxu0 %v1678_v16  ;;  %v1881_v30 = vld [vmem:[%s2104_s12 + $0x54] sm:$0xf0]  ;;  %v1813_v31 = vld [vmem:[%s2104_s12 + $0xd0] sm:$0xf]  ;;  %v1674_v33 = vor.u32 %v1860_v26, %v1671_v27  ;;  %v1661_v35 = vld [vmem:[%s2099_s9 + $0x40] sm:$0xf] }
  0x17   : > { %v1897_v32 = vld [vmem:[%s2104_s12 + $0xd4] sm:$0xf0]  ;;  %529 = vmatpush.bf16.msra.mxu1 %v1682_v17  ;;  %764 = vmatpush.bf16.msra.mxu2 %v1758_v21  ;;  %v1750_v34 = vor.u32 %v1881_v30, %v1749_v28  ;;  %v1859_v36 = vld [vmem:[%s2099_s9 + $0x44] sm:$0xf0]  ;;  %v1858_v37 = vld [vmem:[%s2099_s9 + $0x44] sm:$0xf] }
  0x18   : > { %783 = vmatpush.bf16.msra.mxu3 %v1822_v25  ;;  %v1814_v38 = vor.u32 %v1897_v32, %v1813_v31  ;;  %v1663_v39 = vld [vmem:[%s2099_s9 + $0x48] sm:$0xf0]  ;;  %v1741_v40 = vld [vmem:[%s2104_s12 + $0x40] sm:$0xf]  ;;  %v1879_v41 = vld [vmem:[%s2104_s12 + $0x44] sm:$0xf0]  ;;  %v1662_v44 = vor.u32 %v1859_v36, %v1661_v35 }
  0x19   : > { %v1805_v42 = vld [vmem:[%s2104_s12 + $0xc0] sm:$0xf]  ;;  %v1895_v43 = vld [vmem:[%s2104_s12 + $0xc4] sm:$0xf0]  ;;  %v1666_v45 = vor.u32 %v1858_v37, %v1663_v39  ;;  %v1742_v46 = vor.u32 %v1879_v41, %v1741_v40  ;;  %v1653_v47 = vld [vmem:[%s2099_s9 + $0x30] sm:$0xf] }
  0x1a   : > { %511 = vmatpush.bf16.msra.mxu0 %v1670_v29  ;;  %v1857_v48 = vld [vmem:[%s2099_s9 + $0x34] sm:$0xf0]  ;;  %v1856_v49 = vld [vmem:[%s2099_s9 + $0x34] sm:$0xf]  ;;  %v1806_v50 = vor.u32 %v1895_v43, %v1805_v42  ;;  %v1655_v51 = vld [vmem:[%s2099_s9 + $0x38] sm:$0xf0] }
  0x1b   : > { %530 = vmatpush.bf16.msra.mxu1 %v1674_v33  ;;  %765 = vmatpush.bf16.msra.mxu2 %v1750_v34  ;;  %v1733_v52 = vld [vmem:[%s2104_s12 + $0x30] sm:$0xf]  ;;  %v1877_v53 = vld [vmem:[%s2104_s12 + $0x34] sm:$0xf0]  ;;  %v1654_v56 = vor.u32 %v1857_v48, %v1653_v47  ;;  %v1658_v57 = vor.u32 %v1856_v49, %v1655_v51  ;;  %v1645_v59 = vld [vmem:[%s2099_s9 + $0x20] sm:$0xf] }
  0x1c   : > { %784 = vmatpush.bf16.msra.mxu3 %v1814_v38  ;;  %v1797_v54 = vld [vmem:[%s2104_s12 + $0xb0] sm:$0xf]  ;;  %v1893_v55 = vld [vmem:[%s2104_s12 + $0xb4] sm:$0xf0]  ;;  %v1734_v58 = vor.u32 %v1877_v53, %v1733_v52  ;;  %v1855_v60 = vld [vmem:[%s2099_s9 + $0x24] sm:$0xf0] }
  0x1d   : > { %v1854_v61 = vld [vmem:[%s2099_s9 + $0x24] sm:$0xf]  ;;  %v1798_v62 = vor.u32 %v1893_v55, %v1797_v54  ;;  %v1647_v63 = vld [vmem:[%s2099_s9 + $0x28] sm:$0xf0]  ;;  %v1725_v0 = vld [vmem:[%s2104_s12 + $0x20] sm:$0xf]  ;;  %v1646_v4 = vor.u32 %v1855_v60, %v1645_v59 }
  0x1e   : > { %512 = vmatpush.bf16.msra.mxu0 %v1662_v44  ;;  %v1875_v1 = vld [vmem:[%s2104_s12 + $0x24] sm:$0xf0]  ;;  %v1789_v2 = vld [vmem:[%s2104_s12 + $0xa0] sm:$0xf]  ;;  %v1650_v5 = vor.u32 %v1854_v61, %v1647_v63  ;;  %v1637_v7 = vld [vmem:[%s2099_s9 + $0x10] sm:$0xf] }
  0x1f   : > { %531 = vmatpush.bf16.msra.mxu1 %v1666_v45  ;;  %766 = vmatpush.bf16.msra.mxu2 %v1742_v46  ;;  %v1891_v3 = vld [vmem:[%s2104_s12 + $0xa4] sm:$0xf0]  ;;  %v1726_v6 = vor.u32 %v1875_v1, %v1725_v0  ;;  %v1853_v8 = vld [vmem:[%s2099_s9 + $0x14] sm:$0xf0]  ;;  %v1852_v9 = vld [vmem:[%s2099_s9 + $0x14] sm:$0xf] }
  0x20   : > { %785 = vmatpush.bf16.msra.mxu3 %v1806_v50  ;;  %v1790_v10 = vor.u32 %v1891_v3, %v1789_v2  ;;  %v1639_v11 = vld [vmem:[%s2099_s9 + $0x18] sm:$0xf0]  ;;  %v1717_v12 = vld [vmem:[%s2104_s12 + $0x10] sm:$0xf]  ;;  %v1873_v13 = vld [vmem:[%s2104_s12 + $0x14] sm:$0xf0]  ;;  %v1638_v16 = vor.u32 %v1853_v8, %v1637_v7 }
  0x21   : > { %v1781_v14 = vld [vmem:[%s2104_s12 + $0x90] sm:$0xf]  ;;  %v1889_v15 = vld [vmem:[%s2104_s12 + $0x94] sm:$0xf0]  ;;  %v1629_v17 = vld [vmem:[%s2099_s9] sm:$0xf]  ;;  %v1642_v18 = vor.u32 %v1852_v9, %v1639_v11  ;;  %v1718_v19 = vor.u32 %v1873_v13, %v1717_v12 }
  0x22   : > { %513 = vmatpush.bf16.msra.mxu0 %v1654_v56  ;;  %v1851_v20 = vld [vmem:[%s2099_s9 + $0x4] sm:$0xf0]  ;;  %v1850_v21 = vld [vmem:[%s2099_s9 + $0x4] sm:$0xf]  ;;  %v1631_v22 = vld [vmem:[%s2099_s9 + $0x8] sm:$0xf0]  ;;  %v1782_v23 = vor.u32 %v1889_v15, %v1781_v14 }
  0x23   : > { %532 = vmatpush.bf16.msra.mxu1 %v1658_v57  ;;  %767 = vmatpush.bf16.msra.mxu2 %v1734_v58  ;;  %v1709_v24 = vld [vmem:[%s2104_s12] sm:$0xf]  ;;  %v1871_v25 = vld [vmem:[%s2104_s12 + $0x4] sm:$0xf0]  ;;  %v1884_v28 = vld [vmem:[%s2104_s12 + $0x74] sm:$0xf]  ;;  %v1630_v30 = vor.u32 %v1851_v20, %v1629_v17  ;;  %v1634_v33 = vor.u32 %v1850_v21, %v1631_v22 }
  0x24   : > { %786 = vmatpush.bf16.msra.mxu3 %v1798_v62  ;;  %v1773_v26 = vld [vmem:[%s2104_s12 + $0x80] sm:$0xf]  ;;  %v1887_v27 = vld [vmem:[%s2104_s12 + $0x84] sm:$0xf0]  ;;  %v1767_v29 = vld [vmem:[%s2104_s12 + $0x78] sm:$0xf0]  ;;  %v1710_v34 = vor.u32 %v1871_v25, %v1709_v24 }
  0x25   : > { %v1900_v31 = vld [vmem:[%s2104_s12 + $0xf4] sm:$0xf]  ;;  %v1831_v32 = vld [vmem:[%s2104_s12 + $0xf8] sm:$0xf0]  ;;  %v1693_v35 = vld [vmem:[%s2609_s3] sm:$0xf]  ;;  %v1774_v37 = vor.u32 %v1887_v27, %v1773_v26  ;;  %v1770_v40 = vor.u32 %v1884_v28, %v1767_v29 }
  0x26   : > { %514 = vmatpush.bf16.msra.mxu0 %v1646_v4  ;;  %v1867_v36 = vld [vmem:[%s2609_s3 + $0x4] sm:$0xf0]  ;;  %v1866_v38 = vld [vmem:[%s2609_s3 + $0x4] sm:$0xf]  ;;  %v1695_v39 = vld [vmem:[%s2609_s3 + $0x8] sm:$0xf0]  ;;  %v1834_v42 = vor.u32 %v1900_v31, %v1831_v32 }
  0x27   : > { %533 = vmatpush.bf16.msra.mxu1 %v1650_v5  ;;  %768 = vmatpush.bf16.msra.mxu2 %v1726_v6  ;;  %v1848_v41 = vld [vmem:[%s2608_s2] sm:$0xff]  ;;  %v1759_v44 = vld [vmem:[%s2104_s12 + $0x68] sm:$0xf0]  ;;  %v2191_v45 = vor.u32 %v1867_v36, %v1693_v35  ;;  %v2195_v48 = vor.u32 %v1866_v38, %v1695_v39  ;;  %v1880_v51 = vld [vmem:[%s2104_s12 + $0x54] sm:$0xf]  ;;  %s2526_s13 = sshll.u32 %s2627_s24, 4 }
  0x28   : > { %787 = vmatpush.bf16.msra.mxu3 %v1790_v10  ;;  %v1882_v43 = vld [vmem:[%s2104_s12 + $0x64] sm:$0xf]  ;;  %v1823_v47 = vld [vmem:[%s2104_s12 + $0xe8] sm:$0xf0]  ;;  %v1751_v52 = vld [vmem:[%s2104_s12 + $0x58] sm:$0xf0]  ;;  %s375_s17 = scalar_lea.vmem %s2613_s7, %s2526_s13  ;;  %s370_s20 = scalar_lea.vmem %s2612_s6, %s2526_s13 }
  0x29   : > { %v1898_v46 = vld [vmem:[%s2104_s12 + $0xe4] sm:$0xf]  ;;  %v1762_v49 = vor.u32 %v1882_v43, %v1759_v44  ;;  %v1896_v53 = vld [vmem:[%s2104_s12 + $0xd4] sm:$0xf]  ;;  %v1815_v54 = vld [vmem:[%s2104_s12 + $0xd8] sm:$0xf0]  ;;  %v1754_v55 = vor.u32 %v1880_v51, %v1751_v52 }
  0x2a   : > { %515 = vmatpush.bf16.msra.mxu0 %v1638_v16  ;;  %v1826_v50 = vor.u32 %v1898_v46, %v1823_v47  ;;  %v1818_v56 = vor.u32 %v1896_v53, %v1815_v54  ;;  %v1878_v57 = vld [vmem:[%s2104_s12 + $0x44] sm:$0xf]  ;;  %v1743_v58 = vld [vmem:[%s2104_s12 + $0x48] sm:$0xf0]  ;;  %v1876_v63 = vld [vmem:[%s2104_s12 + $0x34] sm:$0xf] }
  0x2b   : > { %534 = vmatpush.bf16.msra.mxu1 %v1642_v18  ;;  %769 = vmatpush.bf16.msra.mxu2 %v1718_v19  ;;  %v1894_v59 = vld [vmem:[%s2104_s12 + $0xc4] sm:$0xf]  ;;  %v1807_v60 = vld [vmem:[%s2104_s12 + $0xc8] sm:$0xf0]  ;;  %v1746_v61 = vor.u32 %v1878_v57, %v1743_v58  ;;  %v1735_v0 = vld [vmem:[%s2104_s12 + $0x38] sm:$0xf0] }
  0x2c   : > { %788 = vmatpush.bf16.msra.mxu3 %v1782_v23  ;;  %v1810_v62 = vor.u32 %v1894_v59, %v1807_v60  ;;  %v1892_v1 = vld [vmem:[%s2104_s12 + $0xb4] sm:$0xf]  ;;  %v1799_v2 = vld [vmem:[%s2104_s12 + $0xb8] sm:$0xf0]  ;;  %v1701_v3 = vld [vmem:[%s2609_s3 + $0x10] sm:$0xf]  ;;  %v1738_v7 = vor.u32 %v1876_v63, %v1735_v0 }
  0x2d   : > { %v1869_v4 = vld [vmem:[%s2609_s3 + $0x14] sm:$0xf0]  ;;  %v1868_v5 = vld [vmem:[%s2609_s3 + $0x14] sm:$0xf]  ;;  %v1703_v6 = vld [vmem:[%s2609_s3 + $0x18] sm:$0xf0]  ;;  %v1802_v9 = vor.u32 %v1892_v1, %v1799_v2 }
  0x2e   : > { %516 = vmatpush.bf16.msra.mxu0 %v1630_v30  ;;  %v1849_v8 = vld [vmem:[%s2608_s2 + $0x8] sm:$0xff]  ;;  %v1874_v10 = vld [vmem:[%s2104_s12 + $0x24] sm:$0xf]  ;;  %v1702_v12 = vor.u32 %v1869_v4, %v1701_v3  ;;  %v1706_v15 = vor.u32 %v1868_v5, %v1703_v6  ;;  %v1872_v18 = vld [vmem:[%s2104_s12 + $0x14] sm:$0xf]  ;;  %v2030_v1 = vmov 0.0  }
  0x2f   : > { %535 = vmatpush.bf16.msra.mxu1 %v1634_v33  ;;  %770 = vmatpush.bf16.msra.mxu2 %v1710_v34  ;;  %v1727_v11 = vld [vmem:[%s2104_s12 + $0x28] sm:$0xf0]  ;;  %v1890_v13 = vld [vmem:[%s2104_s12 + $0xa4] sm:$0xf]  ;;  %v1719_v19 = vld [vmem:[%s2104_s12 + $0x18] sm:$0xf0] }
  0x30   : > { %789 = vmatpush.bf16.msra.mxu3 %v1774_v37  ;;  %v1791_v14 = vld [vmem:[%s2104_s12 + $0xa8] sm:$0xf0]  ;;  %v1730_v16 = vor.u32 %v1874_v10, %v1727_v11  ;;  %v1888_v20 = vld [vmem:[%s2104_s12 + $0x94] sm:$0xf]  ;;  %v1783_v21 = vld [vmem:[%s2104_s12 + $0x98] sm:$0xf0]  ;;  %v1722_v22 = vor.u32 %v1872_v18, %v1719_v19 }
  0x31   : > { %517 = vmatmul.bf16.vlgmr.msra.gmra.mxu0 %v1848_v41  ;;  %v1794_v17 = vor.u32 %v1890_v13, %v1791_v14  ;;  %v1786_v23 = vor.u32 %v1888_v20, %v1783_v21  ;;  %v1870_v24 = vld [vmem:[%s2104_s12 + $0x4] sm:$0xf]  ;;  %v1711_v25 = vld [vmem:[%s2104_s12 + $0x8] sm:$0xf0]  ;;  %381 = vst.msk [vmem:[#allocation4] sm:$0xff] %vm380_vm0, %v2030_v1 }
  0x32   : > { %801 = vmatpush.bf16.msrb.mxu0 %v1770_v40  ;;  %536 = vmatmul.bf16.vlgmr.msra.gmra.mxu1 %v1848_v41  ;;  %v1886_v26 = vld [vmem:[%s2104_s12 + $0x84] sm:$0xf]  ;;  %v1775_v27 = vld [vmem:[%s2104_s12 + $0x88] sm:$0xf0]  ;;  %v1714_v28 = vor.u32 %v1870_v24, %v1711_v25  ;;  %382 = vst.msk [vmem:[#allocation4 + $0x8] sm:$0xff] %vm380_vm0, %v2030_v1  ;;  %s365_s12 = scalar_lea.vmem %s2611_s5, %s2526_s13 }
  0x33   : > { %820 = vmatpush.bf16.msrb.mxu1 %v1834_v42  ;;  %771 = vmatmul.bf16.vlgmr.msra.gmra.mxu2 %v2191_v45  ;;  %v1778_v29 = vor.u32 %v1886_v26, %v1775_v27  ;;  %383 = vst.msk [vmem:[#allocation4 + $0x10] sm:$0xff] %vm380_vm0, %v2030_v1 }
  0x34   : > { %790 = vmatmul.bf16.vlgmr.msra.gmra.mxu3 %v2195_v48  ;;  %1902 = vmatpush.bf16.msrb.mxu2 %v1770_v40  ;;  %384 = vst.msk [vmem:[#allocation4 + $0x18] sm:$0xff] %vm380_vm0, %v2030_v1 }
  0x35   : > { %1910 = vmatpush.bf16.msrb.mxu3 %v1834_v42  ;;  %385 = vst.msk [vmem:[#allocation5] sm:$0xff] %vm380_vm0, %v2030_v1 }
  0x36   : > { %802 = vmatpush.bf16.msrb.mxu0 %v1762_v49  ;;  %386 = vst.msk [vmem:[#allocation5 + $0x8] sm:$0xff] %vm380_vm0, %v2030_v1 }
  0x37   : > { %821 = vmatpush.bf16.msrb.mxu1 %v1826_v50  ;;  %387 = vst.msk [vmem:[#allocation5 + $0x10] sm:$0xff] %vm380_vm0, %v2030_v1 }
  0x38   : > { %1903 = vmatpush.bf16.msrb.mxu2 %v1762_v49  ;;  %388 = vst.msk [vmem:[#allocation5 + $0x18] sm:$0xff] %vm380_vm0, %v2030_v1 }
  0x39   : > { %1911 = vmatpush.bf16.msrb.mxu3 %v1826_v50  ;;  %389 = vst.msk [vmem:[#allocation6] sm:$0xff] %vm380_vm0, %v2030_v1 }
  0x3a   : > { %803 = vmatpush.bf16.msrb.mxu0 %v1754_v55  ;;  %390 = vst.msk [vmem:[#allocation6 + $0x8] sm:$0xff] %vm380_vm0, %v2030_v1 }
  0x3b   : > { %822 = vmatpush.bf16.msrb.mxu1 %v1818_v56  ;;  %391 = vst.msk [vmem:[#allocation6 + $0x10] sm:$0xff] %vm380_vm0, %v2030_v1 }
  0x3c   : > { %1904 = vmatpush.bf16.msrb.mxu2 %v1754_v55  ;;  %392 = vst.msk [vmem:[#allocation6 + $0x18] sm:$0xff] %vm380_vm0, %v2030_v1 }
  0x3d   : > { %1912 = vmatpush.bf16.msrb.mxu3 %v1818_v56  ;;  %393 = vst.msk [vmem:[#allocation7] sm:$0xff] %vm380_vm0, %v2030_v1 }
  0x3e   : > { %804 = vmatpush.bf16.msrb.mxu0 %v1746_v61  ;;  %394 = vst.msk [vmem:[#allocation7 + $0x8] sm:$0xff] %vm380_vm0, %v2030_v1 }
  0x3f   : > { %823 = vmatpush.bf16.msrb.mxu1 %v1810_v62  ;;  %395 = vst.msk [vmem:[#allocation7 + $0x10] sm:$0xff] %vm380_vm0, %v2030_v1 }
  0x40   : > { %1905 = vmatpush.bf16.msrb.mxu2 %v1746_v61  ;;  %396 = vst.msk [vmem:[#allocation7 + $0x18] sm:$0xff] %vm380_vm0, %v2030_v1 }
  0x41   : > { %1913 = vmatpush.bf16.msrb.mxu3 %v1810_v62  ;;  %522 = vmatmul.bf16.gmra.mxu0 %v1849_v8 }
  0x42   : > { %805 = vmatpush.bf16.msrb.mxu0 %v1738_v7  ;;  %541 = vmatmul.bf16.gmra.mxu1 %v1849_v8 }
  0x43   : > { %824 = vmatpush.bf16.msrb.mxu1 %v1802_v9  ;;  %776 = vmatmul.bf16.gmra.mxu2 %v1702_v12 }
  0x44   : > { %795 = vmatmul.bf16.gmra.mxu3 %v1706_v15  ;;  %1906 = vmatpush.bf16.msrb.mxu2 %v1738_v7 }
  0x45   : > { %1914 = vmatpush.bf16.msrb.mxu3 %v1802_v9 }
  0x46   : > { %806 = vmatpush.bf16.msrb.mxu0 %v1730_v16 }
  0x47   : > { %825 = vmatpush.bf16.msrb.mxu1 %v1794_v17 }
  0x48   : > { %1907 = vmatpush.bf16.msrb.mxu2 %v1730_v16 }
  0x49   : > { %1915 = vmatpush.bf16.msrb.mxu3 %v1794_v17 }
  0x4a   : > { %807 = vmatpush.bf16.msrb.mxu0 %v1722_v22 }
  0x4b   : > { %826 = vmatpush.bf16.msrb.mxu1 %v1786_v23 }
  0x4c   : > { %1908 = vmatpush.bf16.msrb.mxu2 %v1722_v22 }
  0x4d   : > { %1916 = vmatpush.bf16.msrb.mxu3 %v1786_v23 }
  0x4e   : > { %808 = vmatpush.bf16.msrb.mxu0 %v1714_v28 }
  0x4f   : > { %827 = vmatpush.bf16.msrb.mxu1 %v1778_v29 }
  0x50   : > { %1909 = vmatpush.bf16.msrb.mxu2 %v1714_v28 }
  0x51   : > { %1917 = vmatpush.bf16.msrb.mxu3 %v1778_v29  ;;  %809 = vmatmul.bf16.vlgmr.msrb.gmra.mxu0 %v2191_v45 }
  0x52   : > { %828 = vmatmul.bf16.vlgmr.msrb.gmra.mxu1 %v2195_v48 }
  0x53   : > { %814 = vmatmul.bf16.vlgmr.msrb.gmra.mxu2 %v1702_v12 }
  0x54   : > { %833 = vmatmul.bf16.vlgmr.msrb.gmra.mxu3 %v1706_v15 }
  0xae   : > { %v2240_v30 = vpop.f32.mrf.mxu0 }
  0xaf   : > { %v2242_v31 = vpop.f32.mrf.mxu1  ;;  %v889_v32 = vmul.f32 %v2240_v30, %v2240_v30 }
  0xb0   : > { %v864_v33 = vadd.f32 %v2242_v31, %v2240_v30  ;;  %v890_v34 = vmul.f32 %v2242_v31, %v2242_v31 }
  0xb2   : > { %865 = vadd.xlane.f32.xlu0 %v864_v33  ;;  %v897_v35 = vadd.f32 %v890_v34, %v889_v32  ;;  %v860_v33 = vld [vmem:[#allocation4] sm:$0xff] }
  0xb4   : > { %898 = vadd.xlane.f32.xlu2 %v897_v35  ;;  %v885_v35 = vld [vmem:[#allocation5] sm:$0xff] }
  0xb6   : > { %v772_v36 = vpop.f32.mrf.mxu2  ;;  %v2250_v38 = vpop.f32.mrf.mxu0 }
  0xb7   : > { %v791_v37 = vpop.f32.mrf.mxu3  ;;  %v2252_v39 = vpop.f32.mrf.mxu1  ;;  %v891_v40 = vmul.f32 %v2250_v38, %v2250_v38 }
  0xb8   : > { %v867_v41 = vadd.f32 %v2252_v39, %v2250_v38  ;;  %v892_v42 = vmul.f32 %v2252_v39, %v2252_v39  ;;  %v2270_v54 = vadd.f32 %v791_v37, %v772_v36 }
  0xba   : > { %868 = vadd.xlane.f32.xlu0 %v867_v41  ;;  %v900_v43 = vadd.f32 %v892_v42, %v891_v40  ;;  %v945_v60 = vmul.f32 %v2270_v54, %v2270_v54  ;;  %v861_v41 = vld [vmem:[#allocation4 + $0x8] sm:$0xff] }
  0xbc   : > { %901 = vadd.xlane.f32.xlu2 %v900_v43  ;;  %v886_v43 = vld [vmem:[#allocation5 + $0x8] sm:$0xff] }
  0xbe   : > { %v774_v44 = vpop.f32.mrf.mxu2  ;;  %v2260_v46 = vpop.f32.mrf.mxu0 }
  0xbf   : > { %v793_v45 = vpop.f32.mrf.mxu3  ;;  %v2262_v47 = vpop.f32.mrf.mxu1  ;;  %v893_v24 = vmul.f32 %v2260_v46, %v2260_v46 }
  0xc0   : > { %v870_v48 = vadd.f32 %v2262_v47, %v2260_v46  ;;  %v2287_v6 = vadd.f32 %v793_v45, %v774_v44  ;;  %v894_v25 = vmul.f32 %v2262_v47, %v2262_v47 }
  0xc2   : > { %v947_v16 = vmul.f32 %v2287_v6, %v2287_v6  ;;  %v903_v27 = vadd.f32 %v894_v25, %v893_v24  ;;  %v2348_v25 = vld [vmem:[%s2610_s4] sm:$0xff] }
  0xc4   : > { %871 = vadd.xlane.f32.xlu2 %v870_v48 }
  0xc6   : > { %v777_v49 = vpop.f32.mrf.mxu2  ;;  %v2266_v51 = vpop.f32.mrf.mxu0 }
  0xc7   : > { %v796_v50 = vpop.f32.mrf.mxu3  ;;  %v2268_v52 = vpop.f32.mrf.mxu1  ;;  %v895_v14 = vmul.f32 %v2266_v51, %v2266_v51 }
  0xc8   : > { %v2280_v63 = vadd.f32 %v796_v50, %v777_v49  ;;  %v896_v15 = vmul.f32 %v2268_v52, %v2268_v52  ;;  %v873_v22 = vadd.f32 %v2268_v52, %v2266_v51 }
  0xca   : > { %v949_v8 = vmul.f32 %v2280_v63, %v2280_v63  ;;  %v906_v20 = vadd.f32 %v896_v15, %v895_v14  ;;  %v917_v15 = vld [vmem:[#allocation6] sm:$0xff] }
  0xce   : > { %v779_v53 = vpop.f32.mrf.mxu2  ;;  %v810_v56 = vpop.f32.mrf.mxu0 }
  0xcf   : > { %v798_v55 = vpop.f32.mrf.mxu3  ;;  %v829_v57 = vpop.f32.mrf.mxu1 }
  0xd0   : > { %v2272_v58 = vadd.f32 %v829_v57, %v810_v56  ;;  %v2324_v23 = vadd.f32 %v798_v55, %v779_v53 }
  0xd2   : > { %v921_v59 = vadd.f32 %v2272_v58, %v2270_v54  ;;  %v946_v61 = vmul.f32 %v2272_v58, %v2272_v58  ;;  %v951_v28 = vmul.f32 %v2324_v23, %v2324_v23 }
  0xd4   : > { %922 = vadd.xlane.f32.xlu1 %v921_v59  ;;  %v953_v62 = vadd.f32 %v946_v61, %v945_v60  ;;  %v862_v59 = vld [vmem:[#allocation4 + $0x10] sm:$0xff] }
  0xd6   : > { %v815_v0 = vpop.f32.mrf.mxu2  ;;  %954 = vadd.xlane.f32.xlu0 %v953_v62  ;;  %v812_v3 = vpop.f32.mrf.mxu0 }
  0xd7   : > { %v834_v2 = vpop.f32.mrf.mxu3  ;;  %v831_v5 = vpop.f32.mrf.mxu1 }
  0xd8   : > { %v2284_v4 = vadd.f32 %v834_v2, %v815_v0  ;;  %v2289_v7 = vadd.f32 %v831_v5, %v812_v3 }
  0xda   : > { %v950_v9 = vmul.f32 %v2284_v4, %v2284_v4  ;;  %v924_v10 = vadd.f32 %v2289_v7, %v2287_v6  ;;  %v927_v12 = vadd.f32 %v2284_v4, %v2280_v63  ;;  %v948_v13 = vmul.f32 %v2289_v7, %v2289_v7 }
  0xdc   : > { %v959_v11 = vadd.f32 %v950_v9, %v949_v8  ;;  %925 = vadd.xlane.f32.xlu1 %v924_v10  ;;  %v956_v19 = vadd.f32 %v948_v13, %v947_v16 }
  0xde   : > { %960 = vadd.xlane.f32.xlu2 %v959_v11  ;;  %928 = vadd.xlane.f32.xlu0 %v927_v12  ;;  %v817_v17 = vpop.f32.mrf.mxu2 }
  0xdf   : > { %v836_v18 = vpop.f32.mrf.mxu3 }
  0xe0   : > { %v2319_v21 = vadd.f32 %v836_v18, %v817_v17  ;;  %v941_v18 = vld [vmem:[#allocation7] sm:$0xff] }
  0xe2   : > { %v952_v26 = vmul.f32 %v2319_v21, %v2319_v21  ;;  %v930_v32 = vadd.f32 %v2319_v21, %v2324_v23 }
  0xe4   : > { %957 = vadd.xlane.f32.xlu1 %v956_v19  ;;  %v962_v29 = vadd.f32 %v952_v26, %v951_v28 }
  0xe6   : > { %907 = vadd.xlane.f32.xlu2 %v906_v20  ;;  %874 = vadd.xlane.f32.xlu0 %v873_v22 }
  0xec   : > { %904 = vadd.xlane.f32.xlu1 %v903_v27 }
  0xee   : > { %963 = vadd.xlane.f32.xlu0 %v962_v29 }
  0xf4   : > { %931 = vadd.xlane.f32.xlu1 %v930_v32 }
 0x125   : > { %v866_v34 = vpop.xlane.xlu0 %865 }
 0x126   : > { %v876_v36 = vadd.f32 %v866_v34, %v860_v33  ;;  %v918_v34 = vld [vmem:[#allocation6 + $0x8] sm:$0xff] }
 0x127   : > { %v899_v37 = vpop.xlane.xlu2 %898 }
 0x128   : > { %881 = vst.msk [vmem:[#allocation4] sm:$0xff] %vm380_vm0, %v876_v36  ;;  %v909_v40 = vadd.f32 %v899_v37, %v885_v35  ;;  %v943_v36 = vld [vmem:[#allocation7 + $0x10] sm:$0xff] }
 0x12a   : > { %913 = vst.msk [vmem:[#allocation5] sm:$0xff] %vm380_vm0, %v909_v40 }
 0x12d   : > { %v869_v42 = vpop.xlane.xlu0 %868 }
 0x12e   : > { %v877_v44 = vadd.f32 %v869_v42, %v861_v41  ;;  %v919_v41 = vld [vmem:[#allocation6 + $0x10] sm:$0xff] }
 0x12f   : > { %v902_v45 = vpop.xlane.xlu2 %901  ;;  %v984_v48 = vld [vmem:[#allocation4] sm:$0xff] }
 0x130   : > { %882 = vst.msk [vmem:[#allocation4 + $0x8] sm:$0xff] %vm380_vm0, %v877_v44  ;;  %v910_v49 = vadd.f32 %v902_v45, %v886_v43  ;;  %v992_v50 = vmul.f32 0.00390625, %v984_v48 }
 0x131   : > { %v988_v53 = vld [vmem:[#allocation5] sm:$0xff] }
 0x132   : > { %914 = vst.msk [vmem:[#allocation5 + $0x8] sm:$0xff] %vm380_vm0, %v910_v49  ;;  %v996_v55 = vmul.f32 0.00390625, %v988_v53  ;;  %v1000_v56 = vmul.f32 %v992_v50, %v992_v50  ;;  %v2360_v49 = vld [vmem:[%s2610_s4 + $0x8] sm:$0xff] }
 0x134   : > { %v1004_v57 = vsub.f32 %v996_v55, %v1000_v56 }
 0x136   : > { %v1008_v60 = vmax.f32 %v1004_v57, 0.0 }
 0x137   : > { %v872_v61 = vpop.xlane.xlu2 %871  ;;  %v985_v62 = vld [vmem:[#allocation4 + $0x8] sm:$0xff] }
 0x138   : > { %v878_v0 = vadd.f32 %v872_v61, %v862_v59  ;;  %v1012_v1 = vadd.f32 1e-05, %v1008_v60  ;;  %v2340_v2 = vmul.f32 0.00390625, %v985_v62 }
 0x139   : > { %v989_v3 = vld [vmem:[#allocation5 + $0x8] sm:$0xff] }
 0x13a   : > { %883 = vst.msk [vmem:[#allocation4 + $0x10] sm:$0xff] %vm380_vm0, %v878_v0  ;;  %1958 = vrsqrt.f32 %v1012_v1  ;;  %v997_v5 = vmul.f32 0.00390625, %v989_v3  ;;  %v1001_v8 = vmul.f32 %v2340_v2, %v2340_v2  ;;  %vm1022_vm2 = vweird.f32 %v1012_v1  ;;  %v942_v0 = vld [vmem:[#allocation7 + $0x8] sm:$0xff] }
 0x13c   : > { %v1005_v9 = vsub.f32 %v997_v5, %v1001_v8 }
 0x13e   : > { %v1009_v10 = vmax.f32 %v1005_v9, 0.0  ;;  %v863_v9 = vld [vmem:[#allocation4 + $0x18] sm:$0xff] }
 0x140   : > { %v1959_v11 = vpop.eup %1958  ;;  %v1013_v12 = vadd.f32 1e-05, %v1009_v10 }
 0x141   : > { %v1017_v13 = vmul.f32 %v1959_v11, %v1012_v1  ;;  %vm1023_vm1 = vweird.f32 %v1959_v11  ;;  %v888_v1 = vld [vmem:[#allocation5 + $0x18] sm:$0xff] }
 0x142   : > { %1960 = vrsqrt.f32 %v1013_v12  ;;  %vm1024_vm3 = vmor %vm1022_vm2, %vm1023_vm1  ;;  %vm1032_vm5 = vweird.f32 %v1013_v12 }
 0x143   : > { %v1018_v14 = vmul.f32 %v1959_v11, %v1017_v13 }
 0x145   : > { %v1019_v16 = vmul.f32 0.5, %v1018_v14 }
 0x147   : > { %v923_v17 = vpop.xlane.xlu1 %922  ;;  %v1020_v19 = vsub.f32 1.5, %v1019_v16 }
 0x148   : > { %v1961_v20 = vpop.eup %1960  ;;  %v933_v22 = vadd.f32 %v923_v17, %v917_v15 }
 0x149   : > { %v955_v24 = vpop.xlane.xlu0 %954  ;;  %v1021_v26 = vmul.f32 %v1959_v11, %v1020_v19  ;;  %v1027_v27 = vmul.f32 %v1961_v20, %v1013_v12  ;;  %vm1033_vm4 = vweird.f32 %v1961_v20 }
 0x14a   : > { %937 = vst.msk [vmem:[#allocation6] sm:$0xff] %vm380_vm0, %v933_v22  ;;  %v965_v28 = vadd.f32 %v955_v24, %v941_v18  ;;  %vm1034_vm6 = vmor %vm1032_vm5, %vm1033_vm4 }
 0x14b   : > { %v1025_v29 = vsel %vm1024_vm3, %v1959_v11, %v1021_v26  ;;  %v1028_v32 = vmul.f32 %v1961_v20, %v1027_v27 }
 0x14c   : > { %969 = vst.msk [vmem:[#allocation7] sm:$0xff] %vm380_vm0, %v965_v28  ;;  %v2353_v33 = vmul.f32 %v1025_v29, %v2348_v25  ;;  %v944_v28 = vld [vmem:[#allocation7 + $0x18] sm:$0xff] }
 0x14d   : > { %v1029_v35 = vmul.f32 0.5, %v1028_v32 }
 0x14e   : > { %v1060_v37 = vmul.f32 %v2353_v33, %v992_v50 }
 0x14f   : > { %v926_v40 = vpop.xlane.xlu1 %925  ;;  %v1030_v42 = vsub.f32 1.5, %v1029_v35 }
 0x150   : > { %v934_v44 = vadd.f32 %v926_v40, %v918_v34  ;;  %1068 = vrot.lane.b32.xlu1 %v1060_v37, %s2031_s16 }
 0x151   : > { %v961_v43 = vpop.xlane.xlu2 %960  ;;  %v929_v48 = vpop.xlane.xlu0 %928  ;;  %v1031_v53 = vmul.f32 %v1961_v20, %v1030_v42  ;;  %v1084_v55 = vld [vmem:[#allocation6] sm:$0xff] }
 0x152   : > { %v967_v45 = vadd.f32 %v961_v43, %v943_v36  ;;  %938 = vst.msk [vmem:[#allocation6 + $0x8] sm:$0xff] %vm380_vm0, %v934_v44  ;;  %v935_v50 = vadd.f32 %v929_v48, %v919_v41  ;;  %v2363_v56 = vmul.f32 0.00390625, %v1084_v55  ;;  %v2032_v36 = vmov 0   ;;  %v986_v44 = vld [vmem:[#allocation4 + $0x10] sm:$0xff] }
 0x153   : > { %v1035_v57 = vsel %vm1034_vm6, %v1961_v20, %v1031_v53  ;;  %v1088_v59 = vld [vmem:[#allocation7] sm:$0xff]  ;;  %v887_v20 = vld [vmem:[#allocation5 + $0x10] sm:$0xff]  ;;  %1946 = vset.pattern.permute.xlu0 %v2032_v36  ;;  %1947 = vset.pattern.permute.xlu2 %v2032_v36 }
 0x154   : > { %971 = vst.msk [vmem:[#allocation7 + $0x10] sm:$0xff] %vm380_vm0, %v967_v45  ;;  %v2368_v60 = vmul.f32 %v1035_v57, %v2360_v49  ;;  %v1096_v61 = vmul.f32 0.00390625, %v1088_v59  ;;  %v1100_v62 = vmul.f32 %v2363_v56, %v2363_v56  ;;  %1948 = vset.pattern.permute.xlu1 %v2032_v36  ;;  %v920_v59 = vld [vmem:[#allocation6 + $0x18] sm:$0xff] }
 0x155   : > { %939 = vst.msk [vmem:[#allocation6 + $0x10] sm:$0xff] %vm380_vm0, %v935_v50 }
 0x156   : > { %v1061_v3 = vmul.f32 %v2368_v60, %v2340_v2  ;;  %v1104_v5 = vsub.f32 %v1096_v61, %v1100_v62  ;;  %v2393_v62 = vmul.f32 0.00390625, %v986_v44 }
 0x157   : > { %v958_v8 = vpop.xlane.xlu1 %957 }
 0x158   : > { %v966_v11 = vadd.f32 %v958_v8, %v942_v0  ;;  %1070 = vrot.lane.b32.xlu2 %v1061_v3, %s2031_s16  ;;  %v1108_v12 = vmax.f32 %v1104_v5, 0.0 }
 0x159   : > { %v908_v10 = vpop.xlane.xlu2 %907  ;;  %v875_v14 = vpop.xlane.xlu0 %874  ;;  %v1085_v19 = vld [vmem:[#allocation6 + $0x8] sm:$0xff] }
 0x15a   : > { %v912_v13 = vadd.f32 %v908_v10, %v888_v1  ;;  %970 = vst.msk [vmem:[#allocation7 + $0x8] sm:$0xff] %vm380_vm0, %v966_v11  ;;  %v879_v15 = vadd.f32 %v875_v14, %v863_v9  ;;  %v1112_v16 = vadd.f32 1e-05, %v1108_v12  ;;  %v2382_v26 = vmul.f32 0.00390625, %v1085_v19 }
 0x15b   : > { %v1090_v18 = vld [vmem:[#allocation7 + $0x10] sm:$0xff] }
 0x15c   : > { %916 = vst.msk [vmem:[#allocation5 + $0x18] sm:$0xff] %vm380_vm0, %v912_v13  ;;  %v1086_v17 = vld [vmem:[#allocation6 + $0x10] sm:$0xff]  ;;  %1962 = vrsqrt.f32 %v1112_v16  ;;  %v1098_v22 = vmul.f32 0.00390625, %v1090_v18  ;;  %v1101_v43 = vmul.f32 %v2382_v26, %v2382_v26  ;;  %v2403_v18 = vld [vmem:[%s2610_s4 + $0x20] sm:$0xff]  ;;  %vm1122_vm8 = vweird.f32 %v1112_v16 }
 0x15d   : > { %884 = vst.msk [vmem:[#allocation4 + $0x18] sm:$0xff] %vm380_vm0, %v879_v15  ;;  %v2378_v2 = vmul.f32 0.00390625, %v1086_v17  ;;  %v1002_v17 = vmul.f32 %v2393_v62, %v2393_v62 }
 0x15f   : > { %v1102_v24 = vmul.f32 %v2378_v2, %v2378_v2  ;;  %v905_v27 = vpop.xlane.xlu1 %904 }
 0x160   : > { %v911_v29 = vadd.f32 %v905_v27, %v887_v20 }
 0x161   : > { %v1106_v32 = vsub.f32 %v1098_v22, %v1102_v24  ;;  %v964_v34 = vpop.xlane.xlu0 %963  ;;  %v1089_v35 = vld [vmem:[#allocation7 + $0x8] sm:$0xff] }
 0x162   : > { %v1963_v37 = vpop.eup %1962  ;;  %915 = vst.msk [vmem:[#allocation5 + $0x10] sm:$0xff] %vm380_vm0, %v911_v29  ;;  %v968_v40 = vadd.f32 %v964_v34, %v944_v28  ;;  %v1097_v42 = vmul.f32 0.00390625, %v1089_v35 }
 0x163   : > { %v1110_v41 = vmax.f32 %v1106_v32, 0.0  ;;  %v1117_v45 = vmul.f32 %v1963_v37, %v1112_v16  ;;  %v991_v53 = vld [vmem:[#allocation5 + $0x18] sm:$0xff]  ;;  %vm1123_vm7 = vweird.f32 %v1963_v37 }
 0x164   : > { %v987_v48 = vld [vmem:[#allocation4 + $0x18] sm:$0xff]  ;;  %972 = vst.msk [vmem:[#allocation7 + $0x18] sm:$0xff] %vm380_vm0, %v968_v40  ;;  %v1105_v50 = vsub.f32 %v1097_v42, %v1101_v43  ;;  %v999_v1 = vmul.f32 0.00390625, %v991_v53  ;;  %vm1124_vm9 = vmor %vm1122_vm8, %vm1123_vm7 }
 0x165   : > { %v1114_v55 = vadd.f32 1e-05, %v1110_v41  ;;  %v2391_v57 = vmul.f32 0.00390625, %v987_v48  ;;  %v1118_v61 = vmul.f32 %v1963_v37, %v1117_v45 }
 0x166   : > { %v1109_v0 = vmax.f32 %v1105_v50, 0.0 }
 0x167   : > { %1964 = vrsqrt.f32 %v1114_v55  ;;  %v1003_v3 = vmul.f32 %v2391_v57, %v2391_v57  ;;  %v932_v5 = vpop.xlane.xlu1 %931  ;;  %v1119_v8 = vmul.f32 0.5, %v1118_v61  ;;  %vm1142_vm11 = vweird.f32 %v1114_v55 }
 0x168   : > { %v936_v9 = vadd.f32 %v932_v5, %v920_v59  ;;  %v1113_v10 = vadd.f32 1e-05, %v1109_v0 }
 0x169   : > { %v1007_v11 = vsub.f32 %v999_v1, %v1003_v3  ;;  %v1120_v12 = vsub.f32 1.5, %v1119_v8  ;;  %v990_v13 = vld [vmem:[#allocation5 + $0x10] sm:$0xff] }
 0x16a   : > { %940 = vst.msk [vmem:[#allocation6 + $0x18] sm:$0xff] %vm380_vm0, %v936_v9  ;;  %1966 = vrsqrt.f32 %v1113_v10  ;;  %v998_v15 = vmul.f32 0.00390625, %v990_v13  ;;  %vm1132_vm14 = vweird.f32 %v1113_v10 }
 0x16b   : > { %v1011_v14 = vmax.f32 %v1007_v11, 0.0  ;;  %v1121_v19 = vmul.f32 %v1963_v37, %v1120_v12  ;;  %v1091_v44 = vld [vmem:[#allocation7 + $0x18] sm:$0xff] }
 0x16c   : > { %v1006_v24 = vsub.f32 %v998_v15, %v1002_v17  ;;  %v1099_v50 = vmul.f32 0.00390625, %v1091_v44 }
 0x16d   : > { %v1965_v20 = vpop.eup %1964  ;;  %v1015_v22 = vadd.f32 1e-05, %v1011_v14  ;;  %v1125_v27 = vsel %vm1124_vm9, %v1963_v37, %v1121_v19  ;;  %v2426_v14 = vld [vmem:[%s2610_s4 + $0x28] sm:$0xff] }
 0x16e   : > { %v1137_v28 = vmul.f32 %v1965_v20, %v1114_v55  ;;  %v2406_v29 = vmul.f32 %v1125_v27, %v2403_v18  ;;  %v1010_v32 = vmax.f32 %v1006_v24, 0.0  ;;  %vm1143_vm10 = vweird.f32 %v1965_v20 }
 0x16f   : > { %1968 = vrsqrt.f32 %v1015_v22  ;;  %vm1144_vm12 = vmor %vm1142_vm11, %vm1143_vm10  ;;  %vm1052_vm1 = vweird.f32 %v1015_v22 }
 0x170   : > { %v1138_v34 = vmul.f32 %v1965_v20, %v1137_v28  ;;  %v1967_v35 = vpop.eup %1966  ;;  %v1160_v40 = vmul.f32 %v2406_v29, %v2363_v56  ;;  %v1014_v41 = vadd.f32 1e-05, %v1010_v32  ;;  %v2418_v56 = vld [vmem:[%s2610_s4 + $0x30] sm:$0xff] }
 0x171   : > { %v1127_v43 = vmul.f32 %v1967_v35, %v1113_v10  ;;  %v1087_v16 = vld [vmem:[#allocation6 + $0x18] sm:$0xff]  ;;  %vm1133_vm13 = vweird.f32 %v1967_v35 }
 0x172   : > { %v1139_v42 = vmul.f32 0.5, %v1138_v34  ;;  %1168 = vrot.lane.b32.xlu0 %v1160_v40, %s2031_s16  ;;  %1970 = vrsqrt.f32 %v1014_v41  ;;  %v2411_v37 = vmul.f32 0.00390625, %v1087_v16  ;;  %vm1134_vm15 = vmor %vm1132_vm14, %vm1133_vm13  ;;  %vm1042_vm4 = vweird.f32 %v1014_v41 }
 0x173   : > { %v1128_v48 = vmul.f32 %v1967_v35, %v1127_v43  ;;  %v978_v43 = vld [vmem:[%s2610_s4 + $0x10] sm:$0xff] }
 0x174   : > { %v1140_v45 = vsub.f32 1.5, %v1139_v42  ;;  %v1103_v59 = vmul.f32 %v2411_v37, %v2411_v37 }
 0x175   : > { %v1969_v53 = vpop.eup %1968  ;;  %v1129_v0 = vmul.f32 0.5, %v1128_v48 }
 0x176   : > { %v1141_v61 = vmul.f32 %v1965_v20, %v1140_v45  ;;  %v1047_v1 = vmul.f32 %v1969_v53, %v1015_v22  ;;  %v1107_v3 = vsub.f32 %v1099_v50, %v1103_v59  ;;  %vm1053_vm0 = vweird.f32 %v1969_v53 }
 0x177   : > { %v1130_v8 = vsub.f32 1.5, %v1129_v0  ;;  %vm1054_vm2 = vmor %vm1052_vm1, %vm1053_vm0  ;;  %v983_v0 = vld [vmem:[%s2610_s4 + $0x38] sm:$0xff] }
 0x178   : > { %v1145_v5 = vsel %vm1144_vm12, %v1965_v20, %v1141_v61  ;;  %v1048_v9 = vmul.f32 %v1969_v53, %v1047_v1  ;;  %v1971_v11 = vpop.eup %1970  ;;  %v1111_v13 = vmax.f32 %v1107_v3, 0.0 }
 0x179   : > { %v2421_v12 = vmul.f32 %v1145_v5, %v2418_v56  ;;  %v1131_v15 = vmul.f32 %v1967_v35, %v1130_v8  ;;  %v1037_v17 = vmul.f32 %v1971_v11, %v1014_v41  ;;  %vm1043_vm3 = vweird.f32 %v1971_v11 }
 0x17a   : > { %v1049_v55 = vmul.f32 0.5, %v1048_v9  ;;  %v1115_v20 = vadd.f32 1e-05, %v1111_v13  ;;  %vm1044_vm5 = vmor %vm1042_vm4, %vm1043_vm3 }
 0x17b   : > { %v1162_v19 = vmul.f32 %v2421_v12, %v2378_v2  ;;  %v1135_v24 = vsel %vm1134_vm15, %v1967_v35, %v1131_v15  ;;  %v1038_v28 = vmul.f32 %v1971_v11, %v1037_v17  ;;  %v2436_v2 = vld [vmem:[%s2610_s4 + $0x18] sm:$0xff] }
 0x17c   : > { %v1050_v27 = vsub.f32 1.5, %v1049_v55  ;;  %v1157_v32 = vmul.f32 %v1135_v24, %v2426_v14  ;;  %1972 = vrsqrt.f32 %v1115_v20  ;;  %vm1152_vm7 = vweird.f32 %v1115_v20 }
 0x17d   : > { %1172 = vrot.lane.b32.xlu0 %v1162_v19, %s2031_s16  ;;  %v1039_v40 = vmul.f32 0.5, %v1038_v28 }
 0x17e   : > { %v1051_v34 = vmul.f32 %v1969_v53, %v1050_v27  ;;  %v1161_v10 = vmul.f32 %v1157_v32, %v2382_v26 }
 0x17f   : > { %v1040_v42 = vsub.f32 1.5, %v1039_v40 }
 0x180   : > { %v1055_v35 = vsel %vm1054_vm2, %v1969_v53, %v1051_v34  ;;  %1170 = vrot.lane.b32.xlu2 %v1161_v10, %s2031_s16 }
 0x181   : > { %v1041_v16 = vmul.f32 %v1971_v11, %v1040_v42  ;;  %v1059_v26 = vmul.f32 %v1055_v35, %v2436_v2 }
 0x182   : > { %v1973_v22 = vpop.eup %1972 }
 0x183   : > { %v1045_v44 = vsel %vm1044_vm5, %v1971_v11, %v1041_v16  ;;  %v1147_v45 = vmul.f32 %v1973_v22, %v1115_v20  ;;  %v1063_v50 = vmul.f32 %v1059_v26, %v2391_v57  ;;  %vm1153_vm6 = vweird.f32 %v1973_v22 }
 0x184   : > { %v1058_v48 = vmul.f32 %v1045_v44, %v978_v43  ;;  %vm1154_vm8 = vmor %vm1152_vm7, %vm1153_vm6 }
 0x185   : > { %1194 = vperm.xlu0 %1946, %v2353_v33   ;;  %v1148_v53 = vmul.f32 %v1973_v22, %v1147_v45 }
 0x186   : > { %v1062_v59 = vmul.f32 %v1058_v48, %v2393_v62  ;;  %v2033_v62 = vmov 1  }
 0x187   : > { %v1149_v61 = vmul.f32 0.5, %v1148_v53 }
 0x188   : > { %1074 = vrot.lane.b32.xlu2 %v1063_v50, %s2031_s16  ;;  %1072 = vrot.lane.b32.xlu1 %v1062_v59, %s2031_s16 }
 0x189   : > { %v1150_v41 = vsub.f32 1.5, %v1149_v61 }
 0x18b   : > { %v1151_v1 = vmul.f32 %v1973_v22, %v1150_v41 }
 0x18d   : > { %v1155_v33 = vsel %vm1154_vm8, %v1973_v22, %v1151_v1  ;;  %1950 = vset.pattern.permute.xlu0 %v2033_v62 }
 0x18e   : > { %v1159_v3 = vmul.f32 %v1155_v33, %v983_v0 }
 0x190   : > { %1199 = vperm.xlu2 %1947, %v2368_v60   ;;  %v1163_v57 = vmul.f32 %v1159_v3, %v2411_v37 }
 0x192   : > { %1174 = vrot.lane.b32.xlu1 %v1163_v57, %s2031_s16 }
 0x198   : > { %1271 = vperm.xlu2 %1947, %v1157_v32  }
 0x19a   : > { %1266 = vperm.xlu1 %1948, %v2406_v29  }
 0x1a0   : > { %1951 = vset.pattern.permute.xlu2 %v2033_v62 }
 0x1a2   : > { %1949 = vset.pattern.permute.xlu1 %v2033_v62 }
 0x1b2   : > { %v1071_v5 = vpop.permute.xlu2 %1070 }
 0x1b3   : > { %v1081_v8 = vsub.f32 %v2360_v49, %v1071_v5 }
 0x1b5   : > { %1227 = vperm.xlu0 %1950, %v1081_v8  }
 0x1c2   : > { %v1069_v9 = vpop.permute.xlu1 %1068 }
 0x1c3   : > { %v1080_v11 = vsub.f32 %v2348_v25, %v1069_v9 }
 0x1c5   : > { %1222 = vperm.xlu1 %1949, %v1080_v11  }
 0x1da   : > { %v1171_v60 = vpop.permute.xlu2 %1170 }
 0x1db   : > { %v1181_v37 = vsub.f32 %v2426_v14, %v1171_v60 }
 0x1dd   : > { %1299 = vperm.xlu1 %1949, %v1181_v37  }
 0x1e2   : > { %v1075_v55 = vpop.permute.xlu2 %1074 }
 0x1e4   : > { %v1169_v13 = vpop.permute.xlu0 %1168 }
 0x1e5   : > { %v1180_v15 = vsub.f32 %v2403_v18, %v1169_v13  ;;  %1953 = vset.pattern.permute.xlu1 %v2032_v36  ;;  %v1083_v18 = vsub.f32 %v2436_v2, %v1075_v55 }
 0x1e6   : > { %1276 = vperm.xlu1 %1953, %v2421_v12  }
 0x1e7   : > { %1294 = vperm.xlu2 %1951, %v1180_v15  }
 0x1ea   : > { %v1200_v19 = vpop.permute.xlu2 %1199 }
 0x1eb   : > { %v1214_v44 = vmul.f32 %v1200_v19, %v2250_v38 }
 0x1ee   : > { %1209 = vperm.xlu1 %1953, %v1059_v26  }
 0x1ef   : > { %1952 = vset.pattern.permute.xlu2 %v2032_v36  ;;  %v1173_v49 = vpop.permute.xlu0 %1172 }
 0x1f0   : > { %1204 = vperm.xlu2 %1952, %v1058_v48   ;;  %v1182_v25 = vsub.f32 %v2418_v56, %v1173_v49 }
 0x1f2   : > { %v1272_v24 = vpop.permute.xlu2 %1271 }
 0x1f3   : > { %v1286_v35 = vmul.f32 %v1272_v24, %v2287_v6 }
 0x1f6   : > { %1956 = vset.pattern.permute.xlu1 %v2033_v62 }
 0x1f7   : > { %v1195_v56 = vpop.permute.xlu0 %1194 }
 0x1f8   : > { %1954 = vset.pattern.permute.xlu2 %v2033_v62  ;;  %v1212_v34 = vmul.f32 %v1195_v56, %v2240_v30  ;;  %v1215_v30 = vmul.f32 %v1200_v19, %v2252_v39 }
 0x1f9   : > { %1304 = vperm.xlu2 %1954, %v1182_v25  }
 0x1fa   : > { %v1073_v29 = vpop.permute.xlu1 %1072 }
 0x1fb   : > { %v1082_v14 = vsub.f32 %v978_v43, %v1073_v29  ;;  %v1287_v43 = vmul.f32 %v1272_v24, %v2289_v7 }
 0x1fd   : > { %1232 = vperm.xlu0 %1950, %v1082_v14  }
 0x201   : > { %1237 = vperm.xlu2 %1954, %v1083_v18  }
 0x204   : > { %v1175_v17 = vpop.permute.xlu1 %1174 }
 0x205   : > { %v1183_v12 = vsub.f32 %v983_v0, %v1175_v17  ;;  %1955 = vset.pattern.permute.xlu0 %v2032_v36  ;;  %v1213_v36 = vmul.f32 %v1195_v56, %v2242_v31 }
 0x206   : > { %1281 = vperm.xlu0 %1955, %v1159_v3  }
 0x207   : > { %1309 = vperm.xlu1 %1956, %v1183_v12  }
 0x20c   : > { %v1267_v20 = vpop.permute.xlu1 %1266 }
 0x20d   : > { %v1284_v32 = vmul.f32 %v1267_v20, %v2270_v54  ;;  %v1285_v10 = vmul.f32 %v1267_v20, %v2272_v58 }
 0x20e   : > { %1957 = vset.pattern.permute.xlu0 %v2033_v62 }
 0x227   : > { %v1228_v16 = vpop.permute.xlu0 %1227 }
 0x228   : > { %v1242_v58 = vadd.f32 %v1228_v16, %v1214_v44  ;;  %v1243_v59 = vadd.f32 %v1228_v16, %v1215_v30 }
 0x22a   : > { %v1250_v0 = vmax.f32 %v1242_v58, 0.0  ;;  %v1251_v1 = vmax.f32 %v1243_v59, 0.0 }
 0x237   : > { %v1223_v27 = vpop.permute.xlu1 %1222 }
 0x238   : > { %v1240_v2 = vadd.f32 %v1223_v27, %v1212_v34  ;;  %v1241_v45 = vadd.f32 %v1223_v27, %v1213_v36 }
 0x23a   : > { %v1248_v48 = vmax.f32 %v1240_v2, 0.0  ;;  %v1249_v61 = vmax.f32 %v1241_v45, 0.0 }
 0x241   : > { %v1295_v28 = vpop.permute.xlu2 %1294 }
 0x242   : > { %v1312_v40 = vadd.f32 %v1295_v28, %v1284_v32  ;;  %v1313_v42 = vadd.f32 %v1295_v28, %v1285_v10 }
 0x244   : > { %v1320_v22 = vmax.f32 %v1312_v40, 0.0  ;;  %v1321_v50 = vmax.f32 %v1313_v42, 0.0 }
 0x246   : > { %v1328_v6 = vadd.f32 %v1320_v22, %v1248_v48  ;;  %v1329_v7 = vadd.f32 %v1321_v50, %v1249_v61 }
 0x248   : > { %v1835_v33 = vmul.f32 -1.442695, %v1328_v6  ;;  %v1836_v38 = vmul.f32 -1.442695, %v1329_v7 }
 0x24a   : > { %1974 = vpow2.f32 %v1835_v33  ;;  %v1205_v8 = vpop.permute.xlu2 %1204 }
 0x24b   : > { %1976 = vpow2.f32 %v1836_v38  ;;  %v1216_v55 = vmul.f32 %v1205_v8, %v2260_v46  ;;  %v1217_v12 = vmul.f32 %v1205_v8, %v2262_v47 }
 0x24f   : > { %v1300_v26 = vpop.permute.xlu1 %1299 }
 0x250   : > { %v1314_v54 = vadd.f32 %v1300_v26, %v1286_v35  ;;  %v1315_v53 = vadd.f32 %v1300_v26, %v1287_v43  ;;  %v1975_v39 = vpop.eup %1974 }
 0x251   : > { %v1977_v9 = vpop.eup %1976  ;;  %v2473_v11 = vadd.f32 1.0, %v1975_v39 }
 0x252   : > { %v1322_v31 = vmax.f32 %v1314_v54, 0.0  ;;  %v1323_v41 = vmax.f32 %v1315_v53, 0.0  ;;  %v2475_v13 = vadd.f32 1.0, %v1977_v9 }
 0x253   : > { %v1305_v18 = vpop.permute.xlu2 %1304  ;;  %vm1349_vm9 = vweird.f32 %v2473_v11  ;;  %v1353_v39 = vand.u32 2147483647, %v2473_v11 }
 0x254   : > { %v1330_v3 = vadd.f32 %v1322_v31, %v1250_v0  ;;  %v1331_v57 = vadd.f32 %v1323_v41, %v1251_v1  ;;  %v1355_v0 = vand.u32 2147483648, %v2473_v11  ;;  %vm1364_vm11 = vweird.f32 %v2475_v13 }
 0x255   : > { %vm1354_vm4 = vcmp.eq.f32.partialorder %v1353_v39, 8.507059e+37 }
 0x256   : > { %v1837_v62 = vmul.f32 -1.442695, %v1330_v3  ;;  %v1838_v5 = vmul.f32 -1.442695, %v1331_v57 }
 0x258   : > { %1978 = vpow2.f32 %v1837_v62  ;;  %v1277_v15 = vpop.permute.xlu1 %1276 }
 0x259   : > { %1980 = vpow2.f32 %v1838_v5  ;;  %v1288_v29 = vmul.f32 %v1277_v15, %v2280_v63  ;;  %v1289_v14 = vmul.f32 %v1277_v15, %v2284_v4 }
 0x25a   : > { %1982 = vrcp.f32 %v2473_v11 }
 0x25b   : > { %1984 = vrcp.f32 %v2475_v13  ;;  %v1316_v19 = vadd.f32 %v1305_v18, %v1288_v29  ;;  %v1317_v20 = vadd.f32 %v1305_v18, %v1289_v14  ;;  %v1238_v30 = vpop.permute.xlu2 %1237 }
 0x25d   : > { %v1324_v28 = vmax.f32 %v1316_v19, 0.0  ;;  %v1325_v32 = vmax.f32 %v1317_v20, 0.0 }
 0x25e   : > { %v1979_v60 = vpop.eup %1978 }
 0x25f   : > { %v1981_v37 = vpop.eup %1980  ;;  %v2478_v49 = vadd.f32 1.0, %v1979_v60  ;;  %v1370_v60 = vand.u32 2147483648, %v2475_v13 }
 0x260   : > { %v2480_v25 = vadd.f32 1.0, %v1981_v37  ;;  %v2487_v17 = vpop.eup %1982  ;;  %v1210_v46 = vpop.permute.xlu1 %1209 }
 0x261   : > { %1986 = vrcp.f32 %v2478_v49  ;;  %v2491_v27 = vpop.eup %1984  ;;  %v1345_v4 = vmul.f32 %v2487_v17, %v2473_v11  ;;  %v1218_v43 = vmul.f32 %v1210_v46, %v2266_v51  ;;  %v1219_v22 = vmul.f32 %v1210_v46, %v2268_v52 }
 0x262   : > { %1988 = vrcp.f32 %v2480_v25  ;;  %v1360_v2 = vmul.f32 %v2491_v27, %v2475_v13  ;;  %vm1350_vm10 = vweird.f32 %v2487_v17  ;;  %vm1365_vm13 = vweird.f32 %v2491_v27 }
 0x263   : > { %v1346_v42 = vsub.f32 1.0, %v1345_v4  ;;  %v1246_v53 = vadd.f32 %v1238_v30, %v1218_v43  ;;  %v1247_v52 = vadd.f32 %v1238_v30, %v1219_v22  ;;  %vm2530_vm12 = vmor %vm1349_vm9, %vm1350_vm10  ;;  %v1393_v11 = vand.u32 2147483648, %v2478_v49 }
 0x264   : > { %v1361_v54 = vsub.f32 1.0, %v1360_v2  ;;  %vm2552_vm0 = vmor %vm1364_vm11, %vm1365_vm13  ;;  %vm1387_vm1 = vweird.f32 %v2478_v49  ;;  %vm1402_vm3 = vweird.f32 %v2480_v25  ;;  %v1371_v46 = vor.u32 1.1754944e-38, %v1370_v60 }
 0x265   : > { %v1347_v59 = vmul.f32 %v2487_v17, %v1346_v42  ;;  %v1254_v1 = vmax.f32 %v1246_v53, 0.0  ;;  %v1453_v42 = vld [vmem:[%s365_s12 + $0x8] sm:$0xff] }
 0x266   : > { %v1362_v7 = vmul.f32 %v2491_v27, %v1361_v54 }
 0x267   : > { %v2495_v10 = vpop.eup %1986  ;;  %v1348_v57 = vadd.f32 %v2487_v17, %v1347_v59 }
 0x268   : > { %v2497_v47 = vpop.eup %1988  ;;  %v1383_v16 = vmul.f32 %v2495_v10, %v2478_v49  ;;  %v1363_v14 = vadd.f32 %v2491_v27, %v1362_v7  ;;  %vm1388_vm14 = vweird.f32 %v2495_v10 }
 0x269   : > { %v1398_v45 = vmul.f32 %v2497_v47, %v2480_v25  ;;  %v1352_v18 = vsel %vm2530_vm12, %v2487_v17, %v1348_v57  ;;  %vm1403_vm15 = vweird.f32 %v2497_v47  ;;  %v1391_v17 = vand.u32 2147483647, %v2478_v49  ;;  %vm2562_vm2 = vmor %vm1387_vm1, %vm1388_vm14 }
 0x26a   : > { %v1384_v6 = vsub.f32 1.0, %v1383_v16  ;;  %vm2573_vm5 = vmor %vm1402_vm3, %vm1403_vm15 }
 0x26b   : > { %v1399_v61 = vsub.f32 1.0, %v1398_v45  ;;  %vm1392_vm7 = vcmp.eq.f32.partialorder %v1391_v17, 8.507059e+37 }
 0x26c   : > { %v1385_v38 = vmul.f32 %v2495_v10, %v1384_v6 }
 0x26d   : > { %v1400_v8 = vmul.f32 %v2497_v47, %v1399_v61 }
 0x26f   : > { %v1233_v24 = vpop.permute.xlu0 %1232  ;;  %v1401_v19 = vadd.f32 %v2497_v47, %v1400_v8 }
 0x270   : > { %v1244_v56 = vadd.f32 %v1233_v24, %v1216_v55  ;;  %v1245_v63 = vadd.f32 %v1233_v24, %v1217_v12  ;;  %v1368_v55 = vand.u32 2147483647, %v2475_v13  ;;  %v1386_v12 = vadd.f32 %v2495_v10, %v1385_v38 }
 0x271   : > { %v1408_v24 = vand.u32 2147483648, %v2480_v25  ;;  %v1406_v13 = vand.u32 2147483647, %v2480_v25  ;;  %v1405_v25 = vsel %vm2573_vm5, %v2497_v47, %v1401_v19 }
 0x272   : > { %v1252_v34 = vmax.f32 %v1244_v56, 0.0  ;;  %v1253_v40 = vmax.f32 %v1245_v63, 0.0  ;;  %v1356_v56 = vor.u32 1.1754944e-38, %v1355_v0  ;;  %v1367_v63 = vsel %vm2552_vm0, %v2491_v27, %v1363_v14 }
 0x273   : > { %v1390_v49 = vsel %vm2562_vm2, %v2495_v10, %v1386_v12  ;;  %vm1369_vm6 = vcmp.eq.f32.partialorder %v1368_v55, 8.507059e+37  ;;  %vm1407_vm8 = vcmp.eq.f32.partialorder %v1406_v13, 8.507059e+37 }
 0x274   : > { %v1332_v35 = vadd.f32 %v1324_v28, %v1252_v34  ;;  %v1333_v36 = vadd.f32 %v1325_v32, %v1253_v40  ;;  %v1357_v32 = vsel %vm1354_vm4, %v1356_v56, %v1352_v18  ;;  %v1394_v34 = vor.u32 1.1754944e-38, %v1393_v11  ;;  %v1452_v40 = vld [vmem:[%s365_s12] sm:$0xff] }
 0x275   : > { %v1372_v10 = vsel %vm1369_vm6, %v1371_v46, %v1367_v63  ;;  %v1454_v54 = vmul.f32 %v1452_v40, %v1357_v32 }
 0x276   : > { %v1839_v26 = vmul.f32 -1.442695, %v1332_v35  ;;  %v1840_v44 = vmul.f32 -1.442695, %v1333_v36  ;;  %v1409_v36 = vor.u32 1.1754944e-38, %v1408_v24  ;;  %v1395_v22 = vsel %vm1392_vm7, %v1394_v34, %v1390_v49 }
 0x277   : > { %v1455_v53 = vmul.f32 %v1453_v42, %v1372_v10 }
 0x278   : > { %1990 = vpow2.f32 %v1839_v26  ;;  %v1282_v48 = vpop.permute.xlu0 %1281  ;;  %v1410_v45 = vsel %vm1407_vm8, %v1409_v36, %v1405_v25 }
 0x279   : > { %1992 = vpow2.f32 %v1840_v44  ;;  %v1290_v58 = vmul.f32 %v1282_v48, %v2324_v23  ;;  %v1291_v51 = vmul.f32 %v1282_v48, %v2319_v21  ;;  %v1310_v50 = vpop.permute.xlu1 %1309  ;;  %v1255_v21 = vmax.f32 %v1247_v52, 0.0 }
 0x27b   : > { %v1318_v31 = vadd.f32 %v1310_v50, %v1290_v58  ;;  %v1319_v41 = vadd.f32 %v1310_v50, %v1291_v51 }
 0x27d   : > { %v1326_v33 = vmax.f32 %v1318_v31, 0.0  ;;  %v1327_v3 = vmax.f32 %v1319_v41, 0.0 }
 0x27e   : > { %v1991_v23 = vpop.eup %1990 }
 0x27f   : > { %v1993_v62 = vpop.eup %1992  ;;  %v2516_v5 = vadd.f32 1.0, %v1991_v23  ;;  %v1334_v9 = vadd.f32 %v1326_v33, %v1254_v1  ;;  %v1335_v15 = vadd.f32 %v1327_v3, %v1255_v21 }
 0x280   : > { %v2522_v37 = vadd.f32 1.0, %v1993_v62 }
 0x281   : > { %1994 = vrcp.f32 %v2516_v5  ;;  %v1429_v47 = vand.u32 2147483647, %v2516_v5  ;;  %v1431_v50 = vand.u32 2147483648, %v2516_v5  ;;  %vm1425_vm11 = vweird.f32 %v2516_v5 }
 0x282   : > { %1996 = vrcp.f32 %v2522_v37  ;;  %v1446_v52 = vand.u32 2147483648, %v2522_v37  ;;  %v1444_v41 = vand.u32 2147483647, %v2522_v37  ;;  %vm1440_vm13 = vweird.f32 %v2522_v37 }
 0x283   : > { %1998 = vtanh.f32 %v1334_v9  ;;  %v1432_v1 = vor.u32 1.1754944e-38, %v1431_v50  ;;  %vm1430_vm15 = vcmp.eq.f32.partialorder %v1429_v47, 8.507059e+37 }
 0x284   : > { %2000 = vtanh.f32 %v1335_v15  ;;  %v1447_v3 = vor.u32 1.1754944e-38, %v1446_v52  ;;  %vm1445_vm0 = vcmp.eq.f32.partialorder %v1444_v41, 8.507059e+37 }
 0x287   : > { %v1995_v27 = vpop.eup %1994 }
 0x288   : > { %v1997_v2 = vpop.eup %1996  ;;  %v1421_v35 = vmul.f32 %v1995_v27, %v2516_v5  ;;  %vm1426_vm9 = vweird.f32 %v1995_v27 }
 0x289   : > { %v1999_v43 = vpop.eup %1998  ;;  %v1436_v16 = vmul.f32 %v1997_v2, %v2522_v37  ;;  %vm1441_vm10 = vweird.f32 %v1997_v2  ;;  %vm1427_vm12 = vmor %vm1425_vm11, %vm1426_vm9 }
 0x28a   : > { %v2001_v26 = vpop.eup %2000  ;;  %v1422_v44 = vsub.f32 1.0, %v1421_v35  ;;  %v1456_v30 = vmul.f32 %v1999_v43, %v1395_v22  ;;  %vm1442_vm14 = vmor %vm1440_vm13, %vm1441_vm10 }
 0x28b   : > { %v1437_v48 = vsub.f32 1.0, %v1436_v16  ;;  %v1457_v58 = vmul.f32 %v2001_v26, %v1410_v45 }
 0x28c   : > { %v1423_v51 = vmul.f32 %v1995_v27, %v1422_v44  ;;  %v1458_v59 = vadd.f32 %v1456_v30, %v1454_v54 }
 0x28d   : > { %v1438_v6 = vmul.f32 %v1997_v2, %v1437_v48  ;;  %v1459_v61 = vadd.f32 %v1457_v58, %v1455_v53 }
 0x28e   : > { %v1424_v31 = vadd.f32 %v1995_v27, %v1423_v51  ;;  %2002 = vtanh.f32 %v1458_v59  ;;  %1466 = vst [vmem:[%s375_s17] sm:$0xff] %v1458_v59 }
 0x28f   : > { %v1439_v0 = vadd.f32 %v1997_v2, %v1438_v6  ;;  %2004 = vtanh.f32 %v1459_v61  ;;  %1467 = vst [vmem:[%s375_s17 + $0x8] sm:$0xff] %v1459_v61 }
 0x290   : > { %v1428_v7 = vsel %vm1427_vm12, %v1995_v27, %v1424_v31 }
 0x291   : > { %v1443_v33 = vsel %vm1442_vm14, %v1997_v2, %v1439_v0  ;;  %v1433_v23 = vsel %vm1430_vm15, %v1432_v1, %v1428_v7 }
 0x292   : > { %v1448_v21 = vsel %vm1445_vm0, %v1447_v3, %v1443_v33 }
 0x294   : > { %v2003_v57 = vpop.eup %2002 }
 0x295   : > { %v2005_v38 = vpop.eup %2004  ;;  %v1462_v62 = vmul.f32 %v2003_v57, %v1433_v23 }
 0x296   : > { %v1463_v5 = vmul.f32 %v2005_v38, %v1448_v21 }
 0x297   : > { %1464 = vst [vmem:[%s370_s20] sm:$0xff] %v1462_v62 }
 0x298   : > { %1465 = vst [vmem:[%s370_s20 + $0x8] sm:$0xff] %v1463_v5 }
 0x299 PF: > { %s18_s26 = sadd.s32 1, %s2028_s26   ;;  %s2622_s24 = smov %s2024_s25 }
 0x29a   : > { %p15_p5 = scmp.ge.s32.totalorder %s18_s26, 4   ;;  %s2623_s25 = smov %s2625_s27 }
 0x29c   :  { %17 = sbr.rel (!%p15_p5) target bundleno = 2 (0x2), region = 102 }

</bundles_post_ra>
